<compile_context>
chip_gen: v7x
topology: tpu7x:2x2x1
jax: 0.10.0
libtpu: 0.0.40
codegen_flags: <defaults>
</compile_context>

<pallas_src>
import functools

import jax
import jax.numpy as jnp
from jax.experimental import pallas as pl
from jax.experimental.pallas import tpu as pltpu

LN_EPS = 1e-5
MASK_VALUE = -1e30  # finite fill: avoids inf-inf/NaN hazards, cheap select


def _layernorm(x_f32, g_f32, b_f32):
    mu = jnp.mean(x_f32, axis=-1, keepdims=True)
    var = jnp.mean(jnp.square(x_f32 - mu), axis=-1, keepdims=True)
    return (x_f32 - mu) * jax.lax.rsqrt(var + LN_EPS) * g_f32 + b_f32


def _gelu_new(x):
    # GPT-2 "gelu_new" (tanh approximation)
    return 0.5 * x * (1.0 + jnp.tanh(0.7978845608028654 * (x + 0.044715 * x * x * x)))


def poincare_block_kernel(x_ref,
                          ln1g_ref, ln1b_ref,
                          wqkv_ref, bqkv_ref,
                          wo_ref, bo_ref,
                          ln2g_ref, ln2b_ref,
                          wfc_ref, bfc_ref,
                          wmp_ref, bmp_ref,
                          out_ref,
                          k_scr, v_scr,
                          *, n_head, tq):
    # TODO(synk): the hyperbolic branch in PoincareBallLinear (rs.poincare_ball_layer)
    # always raises (rs undefined), so only the plain-linear path is implemented.
    qi = pl.program_id(1)
    T = x_ref.shape[1]
    C = x_ref.shape[2]
    D = C // n_head
    scale = 1.0 / (D ** 0.5)
    cdt = x_ref.dtype  # MXU operand dtype (bf16-ready); accumulation stays f32

    g1 = ln1g_ref[...].astype(jnp.float32)
    b1 = ln1b_ref[...].astype(jnp.float32)

    # ---- once per batch element: K / V for the full sequence -> VMEM scratch ----
    @pl.when(qi == 0)
    def _stash_kv():
        h_full = _layernorm(x_ref[0].astype(jnp.float32), g1, b1).astype(cdt)
        for hi in range(n_head):  # per-head (C, D) weights -> lane-aligned stores
            kh = jnp.dot(h_full, wqkv_ref[1, hi],
                         preferred_element_type=jnp.float32) + bqkv_ref[1, hi]
            vh = jnp.dot(h_full, wqkv_ref[2, hi],
                         preferred_element_type=jnp.float32) + bqkv_ref[2, hi]
            k_scr[hi] = kh.astype(k_scr.dtype)
            v_scr[hi] = vh.astype(v_scr.dtype)

    # ---- query tile ----
    q0 = pl.multiple_of(qi * tq, tq)
    xf = x_ref[0, pl.ds(q0, tq), :].astype(jnp.float32)      # (tq, C)
    h_t = _layernorm(xf, g1, b1).astype(cdt)

    # causal mask for this tile (computed once per grid step)
    row = jax.lax.broadcasted_iota(jnp.int32, (tq, T), 0) + q0
    col = jax.lax.broadcasted_iota(jnp.int32, (tq, T), 1)
    causal = row >= col

    # Attention with the output projection fused per head into one f32 accumulator
    attn_acc = jnp.zeros((tq, C), jnp.float32)
    for hi in range(n_head):
        qh = jnp.dot(h_t, wqkv_ref[0, hi],
                     preferred_element_type=jnp.float32) + bqkv_ref[0, hi]
        qh = (qh * scale).astype(cdt)                         # (tq, D)
        s = jnp.dot(qh, k_scr[hi].T, preferred_element_type=jnp.float32)  # (tq, T)
        s = jnp.where(causal, s, MASK_VALUE)
        s = s - jnp.max(s, axis=-1, keepdims=True)
        p = jnp.exp(s)
        inv = pl.reciprocal(jnp.sum(p, axis=-1, keepdims=True), approx=True)
        ho = jnp.dot(p.astype(cdt), v_scr[hi],
                     preferred_element_type=jnp.float32) * inv            # (tq, D)
        attn_acc = attn_acc + jnp.dot(ho.astype(cdt), wo_ref[hi],
                                      preferred_element_type=jnp.float32)  # (tq, C)

    x1 = xf + attn_acc + bo_ref[...]                          # (tq, C), f32

    # ---- ln_2 + MLP, tiled over the same query tile ----
    g2 = ln2g_ref[...].astype(jnp.float32)
    b2 = ln2b_ref[...].astype(jnp.float32)
    h2 = _layernorm(x1, g2, b2).astype(cdt)
    fc = jnp.dot(h2, wfc_ref[...], preferred_element_type=jnp.float32) + bfc_ref[...]
    fc = _gelu_new(fc).astype(cdt)
    m = jnp.dot(fc, wmp_ref[...], preferred_element_type=jnp.float32) + bmp_ref[...]

    out_ref[0] = (x1 + m).astype(out_ref.dtype)


def poincare_block(x, params, n_head, tq=None):
    B, T, C = x.shape
    D = C // n_head
    (ln1g, ln1b, wqkv, bqkv, wo, bo, ln2g, ln2b, wfc, bfc, wmp, bmp) = params

    # Re-layout attention weights to per-head blocks (lane-aligned in the kernel).
    wqkv_r = wqkv.reshape(C, 3, n_head, D).transpose(1, 2, 0, 3)  # (3, H, C, D)
    bqkv_r = bqkv.reshape(3, n_head, 1, D)                        # (3, H, 1, D)
    wo_r = wo.reshape(n_head, D, C)                               # (H, D, C)
    kparams = (ln1g, ln1b, wqkv_r, bqkv_r, wo_r, bo, ln2g, ln2b, wfc, bfc, wmp, bmp)

    if tq is None:
        tq = T if T <= 128 else 128
    assert T % tq == 0, "query tile must divide T"
    nq = T // tq

    # Constant (grid-invariant) operands: single untiled resident VMEM copy
    # instead of double-buffered per-step blocks.
    weight_spec = pl.BlockSpec(memory_space=pltpu.MemorySpace.VMEM)
    in_specs = [pl.BlockSpec((1, T, C), lambda b, q: (b, 0, 0))] \
        + [weight_spec] * len(kparams)
    out_spec = pl.BlockSpec((1, tq, C), lambda b, q: (b, q, 0))

    # Explicit scoped-VMEM budget (with headroom) + advisory cost estimate.
    esz = lambda a: int(a.size) * a.dtype.itemsize
    weight_bytes = sum(esz(p) for p in kparams)
    act_bytes = (2 * T * C * x.dtype.itemsize                    # x block (2 bufs)
                 + 2 * n_head * T * max(D, 128) * x.dtype.itemsize  # K/V scratch
                 + 2 * tq * C * x.dtype.itemsize                 # out block (2 bufs)
                 + 6 * tq * max(T, 4 * C) * 4)                   # f32 transients
    vmem_limit = int(min(64 * 1024 * 1024,
                         max(32 * 1024 * 1024,
                             int(1.5 * (weight_bytes + act_bytes)))))

    flops = 2 * B * T * C * (12 * C) + 4 * B * T * T * C
    transcendentals = B * n_head * T * T + B * T * 4 * C
    bytes_accessed = 2 * int(x.size) * x.dtype.itemsize + weight_bytes

    grid_spec = pltpu.PrefetchScalarGridSpec(
        num_scalar_prefetch=0,
        grid=(B, nq),
        in_specs=in_specs,
        out_specs=out_spec,
        scratch_shapes=[pltpu.VMEM((n_head, T, D), x.dtype),   # K
                        pltpu.VMEM((n_head, T, D), x.dtype)],  # V
    )
    return pl.pallas_call(
        functools.partial(poincare_block_kernel, n_head=n_head, tq=tq),
        out_shape=jax.ShapeDtypeStruct((B, T, C), x.dtype),
        grid_spec=grid_spec,
        compiler_params=pltpu.CompilerParams(
            dimension_semantics=("parallel", "arbitrary"),
            vmem_limit_bytes=vmem_limit),
        cost_estimate=pl.CostEstimate(flops=int(flops),
                                      transcendentals=int(transcendentals),
                                      bytes_accessed=int(bytes_accessed)),
    )(x, *kparams)


def reference(x, params, n_head):
    (ln1g, ln1b, wqkv, bqkv, wo, bo, ln2g, ln2b, wfc, bfc, wmp, bmp) = params
    B, T, C = x.shape
    D = C // n_head
    h = _layernorm(x, ln1g[0], ln1b[0])
    qkv = h @ wqkv + bqkv[0]
    q, k, v = jnp.split(qkv, 3, axis=-1)
    q = q.reshape(B, T, n_head, D).transpose(0, 2, 1, 3)
    k = k.reshape(B, T, n_head, D).transpose(0, 2, 1, 3)
    v = v.reshape(B, T, n_head, D).transpose(0, 2, 1, 3)
    s = jnp.einsum("bhtd,bhsd->bhts", q, k) / (D ** 0.5)
    mask = jnp.tril(jnp.ones((T, T), bool))
    s = jnp.where(mask, s, -jnp.inf)
    p = jax.nn.softmax(s, axis=-1)
    attn = jnp.einsum("bhts,bhsd->bhtd", p, v).transpose(0, 2, 1, 3).reshape(B, T, C)
    a = attn @ wo + bo[0]
    x1 = x + a
    h2 = _layernorm(x1, ln2g[0], ln2b[0])
    fc = _gelu_new(h2 @ wfc + bfc[0])
    m = fc @ wmp + bmp[0]
    return x1 + m


def _make_params(key, C):
    ks = jax.random.split(key, 4)
    ln1g = jnp.ones((1, C), jnp.float32)
    ln1b = jnp.zeros((1, C), jnp.float32)
    ln2g = jnp.ones((1, C), jnp.float32)
    ln2b = jnp.zeros((1, C), jnp.float32)
    wqkv = jax.random.normal(ks[0], (C, 3 * C), jnp.float32) * 0.1
    bqkv = jnp.zeros((1, 3 * C), jnp.float32)
    wo = jax.random.normal(ks[1], (C, C), jnp.float32) * 0.1
    bo = jnp.zeros((1, C), jnp.float32)
    wfc = jax.random.normal(ks[2], (C, 4 * C), jnp.float32) * 0.1
    bfc = jnp.zeros((1, 4 * C), jnp.float32)
    wmp = jax.random.normal(ks[3], (4 * C, C), jnp.float32) * 0.1
    bmp = jnp.zeros((1, C), jnp.float32)
    return (ln1g, ln1b, wqkv, bqkv, wo, bo, ln2g, ln2b, wfc, bfc, wmp, bmp)


if __name__ == "__main__":
    key = jax.random.PRNGKey(0)
    k_x1, k_x2, k_p = jax.random.split(key, 3)

    B, C, n_head = 2, 32, 4
    params = _make_params(k_p, C)

    # Test 1: single query tile (T == tq).
    T1 = 8
    x1 = jax.random.normal(k_x1, (B, T1, C), jnp.float32)
    out1 = jax.block_until_ready(poincare_block(x1, params, n_head))
    ref1 = reference(x1, params, n_head)
    assert out1.shape == (B, T1, C)
    assert jnp.allclose(out1, ref1, atol=5e-3, rtol=5e-3), \
        f"test1 max abs err {jnp.max(jnp.abs(out1 - ref1))}"

    # Test 2: multiple query tiles (exercises the K/V-scratch reuse path).
    T2 = 32
    x2 = jax.random.normal(k_x2, (B, T2, C), jnp.float32)
    out2 = jax.block_until_ready(poincare_block(x2, params, n_head, tq=8))
    ref2 = reference(x2, params, n_head)
    assert out2.shape == (B, T2, C)
    assert jnp.allclose(out2, ref2, atol=5e-3, rtol=5e-3), \
        f"test2 max abs err {jnp.max(jnp.abs(out2 - ref2))}"

    print("KERNEL_OK")
</pallas_src>

<mosaic_0001>
module attributes {stable_mosaic.version = 11 : i64} {
  func.func @poincare_block_kernel(%arg0: i32, %arg1: i32, %arg2: memref<1x8x32xf32, #tpu.memory_space<vmem>>, %arg3: memref<1x32xf32, #tpu.memory_space<vmem>>, %arg4: memref<1x32xf32, #tpu.memory_space<vmem>>, %arg5: memref<3x4x32x8xf32, #tpu.memory_space<vmem>>, %arg6: memref<3x4x1x8xf32, #tpu.memory_space<vmem>>, %arg7: memref<4x8x32xf32, #tpu.memory_space<vmem>>, %arg8: memref<1x32xf32, #tpu.memory_space<vmem>>, %arg9: memref<1x32xf32, #tpu.memory_space<vmem>>, %arg10: memref<1x32xf32, #tpu.memory_space<vmem>>, %arg11: memref<32x128xf32, #tpu.memory_space<vmem>>, %arg12: memref<1x128xf32, #tpu.memory_space<vmem>>, %arg13: memref<128x32xf32, #tpu.memory_space<vmem>>, %arg14: memref<1x32xf32, #tpu.memory_space<vmem>>, %arg15: memref<1x8x32xf32, #tpu.memory_space<vmem>>, %arg16: memref<4x8x8xf32, #tpu.memory_space<vmem>>, %arg17: memref<4x8x8xf32, #tpu.memory_space<vmem>>) attributes {dimension_semantics = [#tpu.dimension_semantics<parallel>, #tpu.dimension_semantics<arbitrary>], iteration_bounds = array<i64: 2, 1>, scalar_prefetch = 0 : i64, scratch_operands = 2 : i64, tpu.core_type = #tpu.core_type<tc>, window_params = [{transform_indices = @transform_0, window_bounds = array<i64: 1, 8, 32>}, {pipeline_mode = #tpu.pipeline_mode<synchronous>, transform_indices = @transform_1, window_bounds = array<i64: 1, 32>}, {pipeline_mode = #tpu.pipeline_mode<synchronous>, transform_indices = @transform_2, window_bounds = array<i64: 1, 32>}, {pipeline_mode = #tpu.pipeline_mode<synchronous>, transform_indices = @transform_3, window_bounds = array<i64: 3, 4, 32, 8>}, {pipeline_mode = #tpu.pipeline_mode<synchronous>, transform_indices = @transform_4, window_bounds = array<i64: 3, 4, 1, 8>}, {pipeline_mode = #tpu.pipeline_mode<synchronous>, transform_indices = @transform_5, window_bounds = array<i64: 4, 8, 32>}, {pipeline_mode = #tpu.pipeline_mode<synchronous>, transform_indices = @transform_6, window_bounds = array<i64: 1, 32>}, {pipeline_mode = #tpu.pipeline_mode<synchronous>, transform_indices = @transform_7, window_bounds = array<i64: 1, 32>}, {pipeline_mode = #tpu.pipeline_mode<synchronous>, transform_indices = @transform_8, window_bounds = array<i64: 1, 32>}, {pipeline_mode = #tpu.pipeline_mode<synchronous>, transform_indices = @transform_9, window_bounds = array<i64: 32, 128>}, {pipeline_mode = #tpu.pipeline_mode<synchronous>, transform_indices = @transform_10, window_bounds = array<i64: 1, 128>}, {pipeline_mode = #tpu.pipeline_mode<synchronous>, transform_indices = @transform_11, window_bounds = array<i64: 128, 32>}, {pipeline_mode = #tpu.pipeline_mode<synchronous>, transform_indices = @transform_12, window_bounds = array<i64: 1, 32>}, {transform_indices = @transform_13, window_bounds = array<i64: 1, 8, 32>}]} {
    %c0 = arith.constant 0 : index
    %c0_0 = arith.constant 0 : index
    %0 = vector.load %arg3[%c0, %c0_0] : memref<1x32xf32, #tpu.memory_space<vmem>>, vector<1x32xf32>
    %c0_1 = arith.constant 0 : index
    %c0_2 = arith.constant 0 : index
    %1 = vector.load %arg4[%c0_1, %c0_2] : memref<1x32xf32, #tpu.memory_space<vmem>>, vector<1x32xf32>
    %c0_i32 = arith.constant 0 : i32
    %2 = arith.cmpi eq, %arg1, %c0_i32 : i32
    %3 = arith.extui %2 : i1 to i32
    %c0_i32_3 = arith.constant 0 : i32
    %4 = arith.cmpi ne, %3, %c0_i32_3 : i32
    scf.if %4 {
      %c0_136 = arith.constant 0 : index
      %c0_137 = arith.constant 0 : index
      %c0_138 = arith.constant 0 : index
      %221 = vector.load %arg2[%c0_136, %c0_137, %c0_138] : memref<1x8x32xf32, #tpu.memory_space<vmem>>, vector<1x8x32xf32>
      %222 = vector.shape_cast %221 : vector<1x8x32xf32> to vector<8x32xf32>
      %cst_139 = arith.constant dense<0.000000e+00> : vector<8xf32>
      %223 = vector.multi_reduction <add>, %222, %cst_139 [1] : vector<8x32xf32> to vector<8xf32>
      %224 = vector.shape_cast %223 : vector<8xf32> to vector<8x1xf32>
      %cst_140 = arith.constant 3.200000e+01 : f32
      %225 = vector.broadcast %cst_140 : f32 to vector<8x1xf32>
      %226 = arith.divf %224, %225 : vector<8x1xf32>
      %227 = vector.broadcast %226 : vector<8x1xf32> to vector<8x32xf32>
      %228 = arith.subf %222, %227 : vector<8x32xf32>
      %229 = arith.mulf %228, %228 : vector<8x32xf32>
      %cst_141 = arith.constant dense<0.000000e+00> : vector<8xf32>
      %230 = vector.multi_reduction <add>, %229, %cst_141 [1] : vector<8x32xf32> to vector<8xf32>
      %231 = vector.shape_cast %230 : vector<8xf32> to vector<8x1xf32>
      %cst_142 = arith.constant 3.200000e+01 : f32
      %232 = vector.broadcast %cst_142 : f32 to vector<8x1xf32>
      %233 = arith.divf %231, %232 : vector<8x1xf32>
      %234 = vector.broadcast %226 : vector<8x1xf32> to vector<8x32xf32>
      %235 = arith.subf %222, %234 : vector<8x32xf32>
      %cst_143 = arith.constant 9.99999974E-6 : f32
      %236 = vector.broadcast %cst_143 : f32 to vector<8x1xf32>
      %237 = arith.addf %233, %236 : vector<8x1xf32>
      %238 = math.rsqrt %237 : vector<8x1xf32>
      %239 = vector.broadcast %238 : vector<8x1xf32> to vector<8x32xf32>
      %240 = arith.mulf %235, %239 : vector<8x32xf32>
      %241 = vector.broadcast %0 : vector<1x32xf32> to vector<8x32xf32>
      %242 = arith.mulf %240, %241 : vector<8x32xf32>
      %243 = vector.broadcast %1 : vector<1x32xf32> to vector<8x32xf32>
      %244 = arith.addf %242, %243 : vector<8x32xf32>
      %c1_144 = arith.constant 1 : index
      %c0_145 = arith.constant 0 : index
      %c0_146 = arith.constant 0 : index
      %c0_147 = arith.constant 0 : index
      %245 = vector.load %arg5[%c1_144, %c0_145, %c0_146, %c0_147] : memref<3x4x32x8xf32, #tpu.memory_space<vmem>>, vector<1x1x32x8xf32>
      %246 = vector.shape_cast %245 : vector<1x1x32x8xf32> to vector<32x8xf32>
      %cst_148 = arith.constant dense<0.000000e+00> : vector<8x8xf32>
      %247 = tpu.matmul %244, %246, %cst_148 {dimension_numbers = #tpu.dot_dimension_numbers<[1], [0], [0], [1], [0, 0, 1, 1], [], []>} : vector<8x32xf32>, vector<32x8xf32>, vector<8x8xf32> -> vector<8x8xf32>
      %c1_149 = arith.constant 1 : index
      %c0_150 = arith.constant 0 : index
      %c0_151 = arith.constant 0 : index
      %c0_152 = arith.constant 0 : index
      %248 = vector.load %arg6[%c1_149, %c0_150, %c0_151, %c0_152] : memref<3x4x1x8xf32, #tpu.memory_space<vmem>>, vector<1x1x1x8xf32>
      %249 = vector.shape_cast %248 : vector<1x1x1x8xf32> to vector<1x8xf32>
      %250 = vector.broadcast %249 : vector<1x8xf32> to vector<8x8xf32>
      %251 = arith.addf %247, %250 : vector<8x8xf32>
      %c2_153 = arith.constant 2 : index
      %c0_154 = arith.constant 0 : index
      %c0_155 = arith.constant 0 : index
      %c0_156 = arith.constant 0 : index
      %252 = vector.load %arg5[%c2_153, %c0_154, %c0_155, %c0_156] : memref<3x4x32x8xf32, #tpu.memory_space<vmem>>, vector<1x1x32x8xf32>
      %253 = vector.shape_cast %252 : vector<1x1x32x8xf32> to vector<32x8xf32>
      %cst_157 = arith.constant dense<0.000000e+00> : vector<8x8xf32>
      %254 = tpu.matmul %244, %253, %cst_157 {dimension_numbers = #tpu.dot_dimension_numbers<[1], [0], [0], [1], [0, 0, 1, 1], [], []>} : vector<8x32xf32>, vector<32x8xf32>, vector<8x8xf32> -> vector<8x8xf32>
      %c2_158 = arith.constant 2 : index
      %c0_159 = arith.constant 0 : index
      %c0_160 = arith.constant 0 : index
      %c0_161 = arith.constant 0 : index
      %255 = vector.load %arg6[%c2_158, %c0_159, %c0_160, %c0_161] : memref<3x4x1x8xf32, #tpu.memory_space<vmem>>, vector<1x1x1x8xf32>
      %256 = vector.shape_cast %255 : vector<1x1x1x8xf32> to vector<1x8xf32>
      %257 = vector.broadcast %256 : vector<1x8xf32> to vector<8x8xf32>
      %258 = arith.addf %254, %257 : vector<8x8xf32>
      %c0_162 = arith.constant 0 : index
      %c0_163 = arith.constant 0 : index
      %c0_164 = arith.constant 0 : index
      %259 = vector.load %arg16[%c0_162, %c0_163, %c0_164] : memref<4x8x8xf32, #tpu.memory_space<vmem>>, vector<1x8x8xf32>
      %260 = vector.shape_cast %259 : vector<1x8x8xf32> to vector<8x8xf32>
      %261 = vector.shape_cast %251 : vector<8x8xf32> to vector<1x8x8xf32>
      tpu.vector_store %arg16[%c0_162, %c0_163, %c0_164], %261 {strides = array<i32>} : memref<4x8x8xf32, #tpu.memory_space<vmem>>, vector<1x8x8xf32>,
      %c0_165 = arith.constant 0 : index
      %c0_166 = arith.constant 0 : index
      %c0_167 = arith.constant 0 : index
      %262 = vector.load %arg17[%c0_165, %c0_166, %c0_167] : memref<4x8x8xf32, #tpu.memory_space<vmem>>, vector<1x8x8xf32>
      %263 = vector.shape_cast %262 : vector<1x8x8xf32> to vector<8x8xf32>
      %264 = vector.shape_cast %258 : vector<8x8xf32> to vector<1x8x8xf32>
      tpu.vector_store %arg17[%c0_165, %c0_166, %c0_167], %264 {strides = array<i32>} : memref<4x8x8xf32, #tpu.memory_space<vmem>>, vector<1x8x8xf32>,
      %c1_168 = arith.constant 1 : index
      %c1_169 = arith.constant 1 : index
      %c0_170 = arith.constant 0 : index
      %c0_171 = arith.constant 0 : index
      %265 = vector.load %arg5[%c1_168, %c1_169, %c0_170, %c0_171] : memref<3x4x32x8xf32, #tpu.memory_space<vmem>>, vector<1x1x32x8xf32>
      %266 = vector.shape_cast %265 : vector<1x1x32x8xf32> to vector<32x8xf32>
      %cst_172 = arith.constant dense<0.000000e+00> : vector<8x8xf32>
      %267 = tpu.matmul %244, %266, %cst_172 {dimension_numbers = #tpu.dot_dimension_numbers<[1], [0], [0], [1], [0, 0, 1, 1], [], []>} : vector<8x32xf32>, vector<32x8xf32>, vector<8x8xf32> -> vector<8x8xf32>
      %c1_173 = arith.constant 1 : index
      %c1_174 = arith.constant 1 : index
      %c0_175 = arith.constant 0 : index
      %c0_176 = arith.constant 0 : index
      %268 = vector.load %arg6[%c1_173, %c1_174, %c0_175, %c0_176] : memref<3x4x1x8xf32, #tpu.memory_space<vmem>>, vector<1x1x1x8xf32>
      %269 = vector.shape_cast %268 : vector<1x1x1x8xf32> to vector<1x8xf32>
      %270 = vector.broadcast %269 : vector<1x8xf32> to vector<8x8xf32>
      %271 = arith.addf %267, %270 : vector<8x8xf32>
      %c2_177 = arith.constant 2 : index
      %c1_178 = arith.constant 1 : index
      %c0_179 = arith.constant 0 : index
      %c0_180 = arith.constant 0 : index
      %272 = vector.load %arg5[%c2_177, %c1_178, %c0_179, %c0_180] : memref<3x4x32x8xf32, #tpu.memory_space<vmem>>, vector<1x1x32x8xf32>
      %273 = vector.shape_cast %272 : vector<1x1x32x8xf32> to vector<32x8xf32>
      %cst_181 = arith.constant dense<0.000000e+00> : vector<8x8xf32>
      %274 = tpu.matmul %244, %273, %cst_181 {dimension_numbers = #tpu.dot_dimension_numbers<[1], [0], [0], [1], [0, 0, 1, 1], [], []>} : vector<8x32xf32>, vector<32x8xf32>, vector<8x8xf32> -> vector<8x8xf32>
      %c2_182 = arith.constant 2 : index
      %c1_183 = arith.constant 1 : index
      %c0_184 = arith.constant 0 : index
      %c0_185 = arith.constant 0 : index
      %275 = vector.load %arg6[%c2_182, %c1_183, %c0_184, %c0_185] : memref<3x4x1x8xf32, #tpu.memory_space<vmem>>, vector<1x1x1x8xf32>
      %276 = vector.shape_cast %275 : vector<1x1x1x8xf32> to vector<1x8xf32>
      %277 = vector.broadcast %276 : vector<1x8xf32> to vector<8x8xf32>
      %278 = arith.addf %274, %277 : vector<8x8xf32>
      %c1_186 = arith.constant 1 : index
      %c0_187 = arith.constant 0 : index
      %c0_188 = arith.constant 0 : index
      %279 = vector.load %arg16[%c1_186, %c0_187, %c0_188] : memref<4x8x8xf32, #tpu.memory_space<vmem>>, vector<1x8x8xf32>
      %280 = vector.shape_cast %279 : vector<1x8x8xf32> to vector<8x8xf32>
      %281 = vector.shape_cast %271 : vector<8x8xf32> to vector<1x8x8xf32>
      tpu.vector_store %arg16[%c1_186, %c0_187, %c0_188], %281 {strides = array<i32>} : memref<4x8x8xf32, #tpu.memory_space<vmem>>, vector<1x8x8xf32>,
      %c1_189 = arith.constant 1 : index
      %c0_190 = arith.constant 0 : index
      %c0_191 = arith.constant 0 : index
      %282 = vector.load %arg17[%c1_189, %c0_190, %c0_191] : memref<4x8x8xf32, #tpu.memory_space<vmem>>, vector<1x8x8xf32>
      %283 = vector.shape_cast %282 : vector<1x8x8xf32> to vector<8x8xf32>
      %284 = vector.shape_cast %278 : vector<8x8xf32> to vector<1x8x8xf32>
      tpu.vector_store %arg17[%c1_189, %c0_190, %c0_191], %284 {strides = array<i32>} : memref<4x8x8xf32, #tpu.memory_space<vmem>>, vector<1x8x8xf32>,
      %c1_192 = arith.constant 1 : index
      %c2_193 = arith.constant 2 : index
      %c0_194 = arith.constant 0 : index
      %c0_195 = arith.constant 0 : index
      %285 = vector.load %arg5[%c1_192, %c2_193, %c0_194, %c0_195] : memref<3x4x32x8xf32, #tpu.memory_space<vmem>>, vector<1x1x32x8xf32>
      %286 = vector.shape_cast %285 : vector<1x1x32x8xf32> to vector<32x8xf32>
      %cst_196 = arith.constant dense<0.000000e+00> : vector<8x8xf32>
      %287 = tpu.matmul %244, %286, %cst_196 {dimension_numbers = #tpu.dot_dimension_numbers<[1], [0], [0], [1], [0, 0, 1, 1], [], []>} : vector<8x32xf32>, vector<32x8xf32>, vector<8x8xf32> -> vector<8x8xf32>
      %c1_197 = arith.constant 1 : index
      %c2_198 = arith.constant 2 : index
      %c0_199 = arith.constant 0 : index
      %c0_200 = arith.constant 0 : index
      %288 = vector.load %arg6[%c1_197, %c2_198, %c0_199, %c0_200] : memref<3x4x1x8xf32, #tpu.memory_space<vmem>>, vector<1x1x1x8xf32>
      %289 = vector.shape_cast %288 : vector<1x1x1x8xf32> to vector<1x8xf32>
      %290 = vector.broadcast %289 : vector<1x8xf32> to vector<8x8xf32>
      %291 = arith.addf %287, %290 : vector<8x8xf32>
      %c2_201 = arith.constant 2 : index
      %c2_202 = arith.constant 2 : index
      %c0_203 = arith.constant 0 : index
      %c0_204 = arith.constant 0 : index
      %292 = vector.load %arg5[%c2_201, %c2_202, %c0_203, %c0_204] : memref<3x4x32x8xf32, #tpu.memory_space<vmem>>, vector<1x1x32x8xf32>
      %293 = vector.shape_cast %292 : vector<1x1x32x8xf32> to vector<32x8xf32>
      %cst_205 = arith.constant dense<0.000000e+00> : vector<8x8xf32>
      %294 = tpu.matmul %244, %293, %cst_205 {dimension_numbers = #tpu.dot_dimension_numbers<[1], [0], [0], [1], [0, 0, 1, 1], [], []>} : vector<8x32xf32>, vector<32x8xf32>, vector<8x8xf32> -> vector<8x8xf32>
      %c2_206 = arith.constant 2 : index
      %c2_207 = arith.constant 2 : index
      %c0_208 = arith.constant 0 : index
      %c0_209 = arith.constant 0 : index
      %295 = vector.load %arg6[%c2_206, %c2_207, %c0_208, %c0_209] : memref<3x4x1x8xf32, #tpu.memory_space<vmem>>, vector<1x1x1x8xf32>
      %296 = vector.shape_cast %295 : vector<1x1x1x8xf32> to vector<1x8xf32>
      %297 = vector.broadcast %296 : vector<1x8xf32> to vector<8x8xf32>
      %298 = arith.addf %294, %297 : vector<8x8xf32>
      %c2_210 = arith.constant 2 : index
      %c0_211 = arith.constant 0 : index
      %c0_212 = arith.constant 0 : index
      %299 = vector.load %arg16[%c2_210, %c0_211, %c0_212] : memref<4x8x8xf32, #tpu.memory_space<vmem>>, vector<1x8x8xf32>
      %300 = vector.shape_cast %299 : vector<1x8x8xf32> to vector<8x8xf32>
      %301 = vector.shape_cast %291 : vector<8x8xf32> to vector<1x8x8xf32>
      tpu.vector_store %arg16[%c2_210, %c0_211, %c0_212], %301 {strides = array<i32>} : memref<4x8x8xf32, #tpu.memory_space<vmem>>, vector<1x8x8xf32>,
      %c2_213 = arith.constant 2 : index
      %c0_214 = arith.constant 0 : index
      %c0_215 = arith.constant 0 : index
      %302 = vector.load %arg17[%c2_213, %c0_214, %c0_215] : memref<4x8x8xf32, #tpu.memory_space<vmem>>, vector<1x8x8xf32>
      %303 = vector.shape_cast %302 : vector<1x8x8xf32> to vector<8x8xf32>
      %304 = vector.shape_cast %298 : vector<8x8xf32> to vector<1x8x8xf32>
      tpu.vector_store %arg17[%c2_213, %c0_214, %c0_215], %304 {strides = array<i32>} : memref<4x8x8xf32, #tpu.memory_space<vmem>>, vector<1x8x8xf32>,
      %c1_216 = arith.constant 1 : index
      %c3_217 = arith.constant 3 : index
      %c0_218 = arith.constant 0 : index
      %c0_219 = arith.constant 0 : index
      %305 = vector.load %arg5[%c1_216, %c3_217, %c0_218, %c0_219] : memref<3x4x32x8xf32, #tpu.memory_space<vmem>>, vector<1x1x32x8xf32>
      %306 = vector.shape_cast %305 : vector<1x1x32x8xf32> to vector<32x8xf32>
      %cst_220 = arith.constant dense<0.000000e+00> : vector<8x8xf32>
      %307 = tpu.matmul %244, %306, %cst_220 {dimension_numbers = #tpu.dot_dimension_numbers<[1], [0], [0], [1], [0, 0, 1, 1], [], []>} : vector<8x32xf32>, vector<32x8xf32>, vector<8x8xf32> -> vector<8x8xf32>
      %c1_221 = arith.constant 1 : index
      %c3_222 = arith.constant 3 : index
      %c0_223 = arith.constant 0 : index
      %c0_224 = arith.constant 0 : index
      %308 = vector.load %arg6[%c1_221, %c3_222, %c0_223, %c0_224] : memref<3x4x1x8xf32, #tpu.memory_space<vmem>>, vector<1x1x1x8xf32>
      %309 = vector.shape_cast %308 : vector<1x1x1x8xf32> to vector<1x8xf32>
      %310 = vector.broadcast %309 : vector<1x8xf32> to vector<8x8xf32>
      %311 = arith.addf %307, %310 : vector<8x8xf32>
      %c2_225 = arith.constant 2 : index
      %c3_226 = arith.constant 3 : index
      %c0_227 = arith.constant 0 : index
      %c0_228 = arith.constant 0 : index
      %312 = vector.load %arg5[%c2_225, %c3_226, %c0_227, %c0_228] : memref<3x4x32x8xf32, #tpu.memory_space<vmem>>, vector<1x1x32x8xf32>
      %313 = vector.shape_cast %312 : vector<1x1x32x8xf32> to vector<32x8xf32>
      %cst_229 = arith.constant dense<0.000000e+00> : vector<8x8xf32>
      %314 = tpu.matmul %244, %313, %cst_229 {dimension_numbers = #tpu.dot_dimension_numbers<[1], [0], [0], [1], [0, 0, 1, 1], [], []>} : vector<8x32xf32>, vector<32x8xf32>, vector<8x8xf32> -> vector<8x8xf32>
      %c2_230 = arith.constant 2 : index
      %c3_231 = arith.constant 3 : index
      %c0_232 = arith.constant 0 : index
      %c0_233 = arith.constant 0 : index
      %315 = vector.load %arg6[%c2_230, %c3_231, %c0_232, %c0_233] : memref<3x4x1x8xf32, #tpu.memory_space<vmem>>, vector<1x1x1x8xf32>
      %316 = vector.shape_cast %315 : vector<1x1x1x8xf32> to vector<1x8xf32>
      %317 = vector.broadcast %316 : vector<1x8xf32> to vector<8x8xf32>
      %318 = arith.addf %314, %317 : vector<8x8xf32>
      %c3_234 = arith.constant 3 : index
      %c0_235 = arith.constant 0 : index
      %c0_236 = arith.constant 0 : index
      %319 = vector.load %arg16[%c3_234, %c0_235, %c0_236] : memref<4x8x8xf32, #tpu.memory_space<vmem>>, vector<1x8x8xf32>
      %320 = vector.shape_cast %319 : vector<1x8x8xf32> to vector<8x8xf32>
      %321 = vector.shape_cast %311 : vector<8x8xf32> to vector<1x8x8xf32>
      tpu.vector_store %arg16[%c3_234, %c0_235, %c0_236], %321 {strides = array<i32>} : memref<4x8x8xf32, #tpu.memory_space<vmem>>, vector<1x8x8xf32>,
      %c3_237 = arith.constant 3 : index
      %c0_238 = arith.constant 0 : index
      %c0_239 = arith.constant 0 : index
      %322 = vector.load %arg17[%c3_237, %c0_238, %c0_239] : memref<4x8x8xf32, #tpu.memory_space<vmem>>, vector<1x8x8xf32>
      %323 = vector.shape_cast %322 : vector<1x8x8xf32> to vector<8x8xf32>
      %324 = vector.shape_cast %318 : vector<8x8xf32> to vector<1x8x8xf32>
      tpu.vector_store %arg17[%c3_237, %c0_238, %c0_239], %324 {strides = array<i32>} : memref<4x8x8xf32, #tpu.memory_space<vmem>>, vector<1x8x8xf32>,
    } else {
    }
    %c8_i32 = arith.constant 8 : i32
    %5 = arith.muli %arg1, %c8_i32 : i32
    %6 = tpu.assume_multiple %5, 8 : i32
    %c0_4 = arith.constant 0 : index
    %7 = arith.index_cast %6 : i32 to index
    %c0_5 = arith.constant 0 : index
    %8 = vector.load %arg2[%c0_4, %7, %c0_5] : memref<1x8x32xf32, #tpu.memory_space<vmem>>, vector<1x8x32xf32>
    %9 = vector.shape_cast %8 : vector<1x8x32xf32> to vector<8x32xf32>
    %cst = arith.constant dense<0.000000e+00> : vector<8xf32>
    %10 = vector.multi_reduction <add>, %9, %cst [1] : vector<8x32xf32> to vector<8xf32>
    %11 = vector.shape_cast %10 : vector<8xf32> to vector<8x1xf32>
    %cst_6 = arith.constant 3.200000e+01 : f32
    %12 = vector.broadcast %cst_6 : f32 to vector<8x1xf32>
    %13 = arith.divf %11, %12 : vector<8x1xf32>
    %14 = vector.broadcast %13 : vector<8x1xf32> to vector<8x32xf32>
    %15 = arith.subf %9, %14 : vector<8x32xf32>
    %16 = arith.mulf %15, %15 : vector<8x32xf32>
    %cst_7 = arith.constant dense<0.000000e+00> : vector<8xf32>
    %17 = vector.multi_reduction <add>, %16, %cst_7 [1] : vector<8x32xf32> to vector<8xf32>
    %18 = vector.shape_cast %17 : vector<8xf32> to vector<8x1xf32>
    %cst_8 = arith.constant 3.200000e+01 : f32
    %19 = vector.broadcast %cst_8 : f32 to vector<8x1xf32>
    %20 = arith.divf %18, %19 : vector<8x1xf32>
    %21 = vector.broadcast %13 : vector<8x1xf32> to vector<8x32xf32>
    %22 = arith.subf %9, %21 : vector<8x32xf32>
    %cst_9 = arith.constant 9.99999974E-6 : f32
    %23 = vector.broadcast %cst_9 : f32 to vector<8x1xf32>
    %24 = arith.addf %20, %23 : vector<8x1xf32>
    %25 = math.rsqrt %24 : vector<8x1xf32>
    %26 = vector.broadcast %25 : vector<8x1xf32> to vector<8x32xf32>
    %27 = arith.mulf %22, %26 : vector<8x32xf32>
    %28 = vector.broadcast %0 : vector<1x32xf32> to vector<8x32xf32>
    %29 = arith.mulf %27, %28 : vector<8x32xf32>
    %30 = vector.broadcast %1 : vector<1x32xf32> to vector<8x32xf32>
    %31 = arith.addf %29, %30 : vector<8x32xf32>
    %32 = tpu.iota {dimensions = array<i32: 0>} : vector<8x8xi32>
    %33 = vector.broadcast %6 : i32 to vector<8x8xi32>
    %34 = arith.addi %32, %33 : vector<8x8xi32>
    %35 = tpu.iota {dimensions = array<i32: 1>} : vector<8x8xi32>
    %36 = arith.cmpi sge, %34, %35 : vector<8x8xi32>
    %cst_10 = arith.constant 0.000000e+00 : f32
    %37 = vector.broadcast %cst_10 : f32 to vector<8x32xf32>
    %c0_11 = arith.constant 0 : index
    %c0_12 = arith.constant 0 : index
    %c0_13 = arith.constant 0 : index
    %c0_14 = arith.constant 0 : index
    %38 = vector.load %arg5[%c0_11, %c0_12, %c0_13, %c0_14] : memref<3x4x32x8xf32, #tpu.memory_space<vmem>>, vector<1x1x32x8xf32>
    %39 = vector.shape_cast %38 : vector<1x1x32x8xf32> to vector<32x8xf32>
    %cst_15 = arith.constant dense<0.000000e+00> : vector<8x8xf32>
    %40 = tpu.matmul %31, %39, %cst_15 {dimension_numbers = #tpu.dot_dimension_numbers<[1], [0], [0], [1], [0, 0, 1, 1], [], []>} : vector<8x32xf32>, vector<32x8xf32>, vector<8x8xf32> -> vector<8x8xf32>
    %c0_16 = arith.constant 0 : index
    %c0_17 = arith.constant 0 : index
    %c0_18 = arith.constant 0 : index
    %c0_19 = arith.constant 0 : index
    %41 = vector.load %arg6[%c0_16, %c0_17, %c0_18, %c0_19] : memref<3x4x1x8xf32, #tpu.memory_space<vmem>>, vector<1x1x1x8xf32>
    %42 = vector.shape_cast %41 : vector<1x1x1x8xf32> to vector<1x8xf32>
    %43 = vector.broadcast %42 : vector<1x8xf32> to vector<8x8xf32>
    %44 = arith.addf %40, %43 : vector<8x8xf32>
    %cst_20 = arith.constant 0.353553385 : f32
    %45 = vector.broadcast %cst_20 : f32 to vector<8x8xf32>
    %46 = arith.mulf %44, %45 : vector<8x8xf32>
    %c0_21 = arith.constant 0 : index
    %c0_22 = arith.constant 0 : index
    %c0_23 = arith.constant 0 : index
    %47 = vector.load %arg16[%c0_21, %c0_22, %c0_23] : memref<4x8x8xf32, #tpu.memory_space<vmem>>, vector<1x8x8xf32>
    %48 = vector.shape_cast %47 : vector<1x8x8xf32> to vector<8x8xf32>
    %49 = tpu.transpose %48, [1, 0] : vector<8x8xf32> -> vector<8x8xf32>
    %cst_24 = arith.constant dense<0.000000e+00> : vector<8x8xf32>
    %50 = tpu.matmul %46, %49, %cst_24 {dimension_numbers = #tpu.dot_dimension_numbers<[1], [0], [0], [1], [0, 0, 1, 1], [], []>} : vector<8x8xf32>, vector<8x8xf32>, vector<8x8xf32> -> vector<8x8xf32>
    %cst_25 = arith.constant -1.000000e+30 : f32
    %51 = vector.broadcast %cst_25 : f32 to vector<8x8xf32>
    %52 = arith.select %36, %50, %51 : vector<8x8xi1>, vector<8x8xf32>
    %cst_26 = arith.constant dense<0xFF800000> : vector<8xf32>
    %53 = vector.multi_reduction <maximumf>, %52, %cst_26 [1] : vector<8x8xf32> to vector<8xf32>
    %54 = vector.shape_cast %53 : vector<8xf32> to vector<8x1xf32>
    %55 = vector.broadcast %54 : vector<8x1xf32> to vector<8x8xf32>
    %56 = arith.subf %52, %55 : vector<8x8xf32>
    %57 = math.exp %56 : vector<8x8xf32>
    %cst_27 = arith.constant dense<0.000000e+00> : vector<8xf32>
    %58 = vector.multi_reduction <add>, %57, %cst_27 [1] : vector<8x8xf32> to vector<8xf32>
    %59 = vector.shape_cast %58 : vector<8xf32> to vector<8x1xf32>
    %60 = tpu.reciprocal %59 {approx = true} : vector<8x1xf32> -> vector<8x1xf32>
    %c0_28 = arith.constant 0 : index
    %c0_29 = arith.constant 0 : index
    %c0_30 = arith.constant 0 : index
    %61 = vector.load %arg17[%c0_28, %c0_29, %c0_30] : memref<4x8x8xf32, #tpu.memory_space<vmem>>, vector<1x8x8xf32>
    %62 = vector.shape_cast %61 : vector<1x8x8xf32> to vector<8x8xf32>
    %cst_31 = arith.constant dense<0.000000e+00> : vector<8x8xf32>
    %63 = tpu.matmul %57, %62, %cst_31 {dimension_numbers = #tpu.dot_dimension_numbers<[1], [0], [0], [1], [0, 0, 1, 1], [], []>} : vector<8x8xf32>, vector<8x8xf32>, vector<8x8xf32> -> vector<8x8xf32>
    %64 = vector.broadcast %60 : vector<8x1xf32> to vector<8x8xf32>
    %65 = arith.mulf %63, %64 : vector<8x8xf32>
    %c0_32 = arith.constant 0 : index
    %c0_33 = arith.constant 0 : index
    %c0_34 = arith.constant 0 : index
    %66 = vector.load %arg7[%c0_32, %c0_33, %c0_34] : memref<4x8x32xf32, #tpu.memory_space<vmem>>, vector<1x8x32xf32>
    %67 = vector.shape_cast %66 : vector<1x8x32xf32> to vector<8x32xf32>
    %cst_35 = arith.constant dense<0.000000e+00> : vector<8x32xf32>
    %68 = tpu.matmul %65, %67, %cst_35 {dimension_numbers = #tpu.dot_dimension_numbers<[1], [0], [0], [1], [0, 0, 1, 1], [], []>} : vector<8x8xf32>, vector<8x32xf32>, vector<8x32xf32> -> vector<8x32xf32>
    %69 = arith.addf %37, %68 : vector<8x32xf32>
    %c0_36 = arith.constant 0 : index
    %c1 = arith.constant 1 : index
    %c0_37 = arith.constant 0 : index
    %c0_38 = arith.constant 0 : index
    %70 = vector.load %arg5[%c0_36, %c1, %c0_37, %c0_38] : memref<3x4x32x8xf32, #tpu.memory_space<vmem>>, vector<1x1x32x8xf32>
    %71 = vector.shape_cast %70 : vector<1x1x32x8xf32> to vector<32x8xf32>
    %cst_39 = arith.constant dense<0.000000e+00> : vector<8x8xf32>
    %72 = tpu.matmul %31, %71, %cst_39 {dimension_numbers = #tpu.dot_dimension_numbers<[1], [0], [0], [1], [0, 0, 1, 1], [], []>} : vector<8x32xf32>, vector<32x8xf32>, vector<8x8xf32> -> vector<8x8xf32>
    %c0_40 = arith.constant 0 : index
    %c1_41 = arith.constant 1 : index
    %c0_42 = arith.constant 0 : index
    %c0_43 = arith.constant 0 : index
    %73 = vector.load %arg6[%c0_40, %c1_41, %c0_42, %c0_43] : memref<3x4x1x8xf32, #tpu.memory_space<vmem>>, vector<1x1x1x8xf32>
    %74 = vector.shape_cast %73 : vector<1x1x1x8xf32> to vector<1x8xf32>
    %75 = vector.broadcast %74 : vector<1x8xf32> to vector<8x8xf32>
    %76 = arith.addf %72, %75 : vector<8x8xf32>
    %cst_44 = arith.constant 0.353553385 : f32
    %77 = vector.broadcast %cst_44 : f32 to vector<8x8xf32>
    %78 = arith.mulf %76, %77 : vector<8x8xf32>
    %c1_45 = arith.constant 1 : index
    %c0_46 = arith.constant 0 : index
    %c0_47 = arith.constant 0 : index
    %79 = vector.load %arg16[%c1_45, %c0_46, %c0_47] : memref<4x8x8xf32, #tpu.memory_space<vmem>>, vector<1x8x8xf32>
    %80 = vector.shape_cast %79 : vector<1x8x8xf32> to vector<8x8xf32>
    %81 = tpu.transpose %80, [1, 0] : vector<8x8xf32> -> vector<8x8xf32>
    %cst_48 = arith.constant dense<0.000000e+00> : vector<8x8xf32>
    %82 = tpu.matmul %78, %81, %cst_48 {dimension_numbers = #tpu.dot_dimension_numbers<[1], [0], [0], [1], [0, 0, 1, 1], [], []>} : vector<8x8xf32>, vector<8x8xf32>, vector<8x8xf32> -> vector<8x8xf32>
    %cst_49 = arith.constant -1.000000e+30 : f32
    %83 = vector.broadcast %cst_49 : f32 to vector<8x8xf32>
    %84 = arith.select %36, %82, %83 : vector<8x8xi1>, vector<8x8xf32>
    %cst_50 = arith.constant dense<0xFF800000> : vector<8xf32>
    %85 = vector.multi_reduction <maximumf>, %84, %cst_50 [1] : vector<8x8xf32> to vector<8xf32>
    %86 = vector.shape_cast %85 : vector<8xf32> to vector<8x1xf32>
    %87 = vector.broadcast %86 : vector<8x1xf32> to vector<8x8xf32>
    %88 = arith.subf %84, %87 : vector<8x8xf32>
    %89 = math.exp %88 : vector<8x8xf32>
    %cst_51 = arith.constant dense<0.000000e+00> : vector<8xf32>
    %90 = vector.multi_reduction <add>, %89, %cst_51 [1] : vector<8x8xf32> to vector<8xf32>
    %91 = vector.shape_cast %90 : vector<8xf32> to vector<8x1xf32>
    %92 = tpu.reciprocal %91 {approx = true} : vector<8x1xf32> -> vector<8x1xf32>
    %c1_52 = arith.constant 1 : index
    %c0_53 = arith.constant 0 : index
    %c0_54 = arith.constant 0 : index
    %93 = vector.load %arg17[%c1_52, %c0_53, %c0_54] : memref<4x8x8xf32, #tpu.memory_space<vmem>>, vector<1x8x8xf32>
    %94 = vector.shape_cast %93 : vector<1x8x8xf32> to vector<8x8xf32>
    %cst_55 = arith.constant dense<0.000000e+00> : vector<8x8xf32>
    %95 = tpu.matmul %89, %94, %cst_55 {dimension_numbers = #tpu.dot_dimension_numbers<[1], [0], [0], [1], [0, 0, 1, 1], [], []>} : vector<8x8xf32>, vector<8x8xf32>, vector<8x8xf32> -> vector<8x8xf32>
    %96 = vector.broadcast %92 : vector<8x1xf32> to vector<8x8xf32>
    %97 = arith.mulf %95, %96 : vector<8x8xf32>
    %c1_56 = arith.constant 1 : index
    %c0_57 = arith.constant 0 : index
    %c0_58 = arith.constant 0 : index
    %98 = vector.load %arg7[%c1_56, %c0_57, %c0_58] : memref<4x8x32xf32, #tpu.memory_space<vmem>>, vector<1x8x32xf32>
    %99 = vector.shape_cast %98 : vector<1x8x32xf32> to vector<8x32xf32>
    %cst_59 = arith.constant dense<0.000000e+00> : vector<8x32xf32>
    %100 = tpu.matmul %97, %99, %cst_59 {dimension_numbers = #tpu.dot_dimension_numbers<[1], [0], [0], [1], [0, 0, 1, 1], [], []>} : vector<8x8xf32>, vector<8x32xf32>, vector<8x32xf32> -> vector<8x32xf32>
    %101 = arith.addf %69, %100 : vector<8x32xf32>
    %c0_60 = arith.constant 0 : index
    %c2 = arith.constant 2 : index
    %c0_61 = arith.constant 0 : index
    %c0_62 = arith.constant 0 : index
    %102 = vector.load %arg5[%c0_60, %c2, %c0_61, %c0_62] : memref<3x4x32x8xf32, #tpu.memory_space<vmem>>, vector<1x1x32x8xf32>
    %103 = vector.shape_cast %102 : vector<1x1x32x8xf32> to vector<32x8xf32>
    %cst_63 = arith.constant dense<0.000000e+00> : vector<8x8xf32>
    %104 = tpu.matmul %31, %103, %cst_63 {dimension_numbers = #tpu.dot_dimension_numbers<[1], [0], [0], [1], [0, 0, 1, 1], [], []>} : vector<8x32xf32>, vector<32x8xf32>, vector<8x8xf32> -> vector<8x8xf32>
    %c0_64 = arith.constant 0 : index
    %c2_65 = arith.constant 2 : index
    %c0_66 = arith.constant 0 : index
    %c0_67 = arith.constant 0 : index
    %105 = vector.load %arg6[%c0_64, %c2_65, %c0_66, %c0_67] : memref<3x4x1x8xf32, #tpu.memory_space<vmem>>, vector<1x1x1x8xf32>
    %106 = vector.shape_cast %105 : vector<1x1x1x8xf32> to vector<1x8xf32>
    %107 = vector.broadcast %106 : vector<1x8xf32> to vector<8x8xf32>
    %108 = arith.addf %104, %107 : vector<8x8xf32>
    %cst_68 = arith.constant 0.353553385 : f32
    %109 = vector.broadcast %cst_68 : f32 to vector<8x8xf32>
    %110 = arith.mulf %108, %109 : vector<8x8xf32>
    %c2_69 = arith.constant 2 : index
    %c0_70 = arith.constant 0 : index
    %c0_71 = arith.constant 0 : index
    %111 = vector.load %arg16[%c2_69, %c0_70, %c0_71] : memref<4x8x8xf32, #tpu.memory_space<vmem>>, vector<1x8x8xf32>
    %112 = vector.shape_cast %111 : vector<1x8x8xf32> to vector<8x8xf32>
    %113 = tpu.transpose %112, [1, 0] : vector<8x8xf32> -> vector<8x8xf32>
    %cst_72 = arith.constant dense<0.000000e+00> : vector<8x8xf32>
    %114 = tpu.matmul %110, %113, %cst_72 {dimension_numbers = #tpu.dot_dimension_numbers<[1], [0], [0], [1], [0, 0, 1, 1], [], []>} : vector<8x8xf32>, vector<8x8xf32>, vector<8x8xf32> -> vector<8x8xf32>
    %cst_73 = arith.constant -1.000000e+30 : f32
    %115 = vector.broadcast %cst_73 : f32 to vector<8x8xf32>
    %116 = arith.select %36, %114, %115 : vector<8x8xi1>, vector<8x8xf32>
    %cst_74 = arith.constant dense<0xFF800000> : vector<8xf32>
    %117 = vector.multi_reduction <maximumf>, %116, %cst_74 [1] : vector<8x8xf32> to vector<8xf32>
    %118 = vector.shape_cast %117 : vector<8xf32> to vector<8x1xf32>
    %119 = vector.broadcast %118 : vector<8x1xf32> to vector<8x8xf32>
    %120 = arith.subf %116, %119 : vector<8x8xf32>
    %121 = math.exp %120 : vector<8x8xf32>
    %cst_75 = arith.constant dense<0.000000e+00> : vector<8xf32>
    %122 = vector.multi_reduction <add>, %121, %cst_75 [1] : vector<8x8xf32> to vector<8xf32>
    %123 = vector.shape_cast %122 : vector<8xf32> to vector<8x1xf32>
    %124 = tpu.reciprocal %123 {approx = true} : vector<8x1xf32> -> vector<8x1xf32>
    %c2_76 = arith.constant 2 : index
    %c0_77 = arith.constant 0 : index
    %c0_78 = arith.constant 0 : index
    %125 = vector.load %arg17[%c2_76, %c0_77, %c0_78] : memref<4x8x8xf32, #tpu.memory_space<vmem>>, vector<1x8x8xf32>
    %126 = vector.shape_cast %125 : vector<1x8x8xf32> to vector<8x8xf32>
    %cst_79 = arith.constant dense<0.000000e+00> : vector<8x8xf32>
    %127 = tpu.matmul %121, %126, %cst_79 {dimension_numbers = #tpu.dot_dimension_numbers<[1], [0], [0], [1], [0, 0, 1, 1], [], []>} : vector<8x8xf32>, vector<8x8xf32>, vector<8x8xf32> -> vector<8x8xf32>
    %128 = vector.broadcast %124 : vector<8x1xf32> to vector<8x8xf32>
    %129 = arith.mulf %127, %128 : vector<8x8xf32>
    %c2_80 = arith.constant 2 : index
    %c0_81 = arith.constant 0 : index
    %c0_82 = arith.constant 0 : index
    %130 = vector.load %arg7[%c2_80, %c0_81, %c0_82] : memref<4x8x32xf32, #tpu.memory_space<vmem>>, vector<1x8x32xf32>
    %131 = vector.shape_cast %130 : vector<1x8x32xf32> to vector<8x32xf32>
    %cst_83 = arith.constant dense<0.000000e+00> : vector<8x32xf32>
    %132 = tpu.matmul %129, %131, %cst_83 {dimension_numbers = #tpu.dot_dimension_numbers<[1], [0], [0], [1], [0, 0, 1, 1], [], []>} : vector<8x8xf32>, vector<8x32xf32>, vector<8x32xf32> -> vector<8x32xf32>
    %133 = arith.addf %101, %132 : vector<8x32xf32>
    %c0_84 = arith.constant 0 : index
    %c3 = arith.constant 3 : index
    %c0_85 = arith.constant 0 : index
    %c0_86 = arith.constant 0 : index
    %134 = vector.load %arg5[%c0_84, %c3, %c0_85, %c0_86] : memref<3x4x32x8xf32, #tpu.memory_space<vmem>>, vector<1x1x32x8xf32>
    %135 = vector.shape_cast %134 : vector<1x1x32x8xf32> to vector<32x8xf32>
    %cst_87 = arith.constant dense<0.000000e+00> : vector<8x8xf32>
    %136 = tpu.matmul %31, %135, %cst_87 {dimension_numbers = #tpu.dot_dimension_numbers<[1], [0], [0], [1], [0, 0, 1, 1], [], []>} : vector<8x32xf32>, vector<32x8xf32>, vector<8x8xf32> -> vector<8x8xf32>
    %c0_88 = arith.constant 0 : index
    %c3_89 = arith.constant 3 : index
    %c0_90 = arith.constant 0 : index
    %c0_91 = arith.constant 0 : index
    %137 = vector.load %arg6[%c0_88, %c3_89, %c0_90, %c0_91] : memref<3x4x1x8xf32, #tpu.memory_space<vmem>>, vector<1x1x1x8xf32>
    %138 = vector.shape_cast %137 : vector<1x1x1x8xf32> to vector<1x8xf32>
    %139 = vector.broadcast %138 : vector<1x8xf32> to vector<8x8xf32>
    %140 = arith.addf %136, %139 : vector<8x8xf32>
    %cst_92 = arith.constant 0.353553385 : f32
    %141 = vector.broadcast %cst_92 : f32 to vector<8x8xf32>
    %142 = arith.mulf %140, %141 : vector<8x8xf32>
    %c3_93 = arith.constant 3 : index
    %c0_94 = arith.constant 0 : index
    %c0_95 = arith.constant 0 : index
    %143 = vector.load %arg16[%c3_93, %c0_94, %c0_95] : memref<4x8x8xf32, #tpu.memory_space<vmem>>, vector<1x8x8xf32>
    %144 = vector.shape_cast %143 : vector<1x8x8xf32> to vector<8x8xf32>
    %145 = tpu.transpose %144, [1, 0] : vector<8x8xf32> -> vector<8x8xf32>
    %cst_96 = arith.constant dense<0.000000e+00> : vector<8x8xf32>
    %146 = tpu.matmul %142, %145, %cst_96 {dimension_numbers = #tpu.dot_dimension_numbers<[1], [0], [0], [1], [0, 0, 1, 1], [], []>} : vector<8x8xf32>, vector<8x8xf32>, vector<8x8xf32> -> vector<8x8xf32>
    %cst_97 = arith.constant -1.000000e+30 : f32
    %147 = vector.broadcast %cst_97 : f32 to vector<8x8xf32>
    %148 = arith.select %36, %146, %147 : vector<8x8xi1>, vector<8x8xf32>
    %cst_98 = arith.constant dense<0xFF800000> : vector<8xf32>
    %149 = vector.multi_reduction <maximumf>, %148, %cst_98 [1] : vector<8x8xf32> to vector<8xf32>
    %150 = vector.shape_cast %149 : vector<8xf32> to vector<8x1xf32>
    %151 = vector.broadcast %150 : vector<8x1xf32> to vector<8x8xf32>
    %152 = arith.subf %148, %151 : vector<8x8xf32>
    %153 = math.exp %152 : vector<8x8xf32>
    %cst_99 = arith.constant dense<0.000000e+00> : vector<8xf32>
    %154 = vector.multi_reduction <add>, %153, %cst_99 [1] : vector<8x8xf32> to vector<8xf32>
    %155 = vector.shape_cast %154 : vector<8xf32> to vector<8x1xf32>
    %156 = tpu.reciprocal %155 {approx = true} : vector<8x1xf32> -> vector<8x1xf32>
    %c3_100 = arith.constant 3 : index
    %c0_101 = arith.constant 0 : index
    %c0_102 = arith.constant 0 : index
    %157 = vector.load %arg17[%c3_100, %c0_101, %c0_102] : memref<4x8x8xf32, #tpu.memory_space<vmem>>, vector<1x8x8xf32>
    %158 = vector.shape_cast %157 : vector<1x8x8xf32> to vector<8x8xf32>
    %cst_103 = arith.constant dense<0.000000e+00> : vector<8x8xf32>
    %159 = tpu.matmul %153, %158, %cst_103 {dimension_numbers = #tpu.dot_dimension_numbers<[1], [0], [0], [1], [0, 0, 1, 1], [], []>} : vector<8x8xf32>, vector<8x8xf32>, vector<8x8xf32> -> vector<8x8xf32>
    %160 = vector.broadcast %156 : vector<8x1xf32> to vector<8x8xf32>
    %161 = arith.mulf %159, %160 : vector<8x8xf32>
    %c3_104 = arith.constant 3 : index
    %c0_105 = arith.constant 0 : index
    %c0_106 = arith.constant 0 : index
    %162 = vector.load %arg7[%c3_104, %c0_105, %c0_106] : memref<4x8x32xf32, #tpu.memory_space<vmem>>, vector<1x8x32xf32>
    %163 = vector.shape_cast %162 : vector<1x8x32xf32> to vector<8x32xf32>
    %cst_107 = arith.constant dense<0.000000e+00> : vector<8x32xf32>
    %164 = tpu.matmul %161, %163, %cst_107 {dimension_numbers = #tpu.dot_dimension_numbers<[1], [0], [0], [1], [0, 0, 1, 1], [], []>} : vector<8x8xf32>, vector<8x32xf32>, vector<8x32xf32> -> vector<8x32xf32>
    %165 = arith.addf %133, %164 : vector<8x32xf32>
    %166 = arith.addf %9, %165 : vector<8x32xf32>
    %c0_108 = arith.constant 0 : index
    %c0_109 = arith.constant 0 : index
    %167 = vector.load %arg8[%c0_108, %c0_109] : memref<1x32xf32, #tpu.memory_space<vmem>>, vector<1x32xf32>
    %168 = vector.broadcast %167 : vector<1x32xf32> to vector<8x32xf32>
    %169 = arith.addf %166, %168 : vector<8x32xf32>
    %c0_110 = arith.constant 0 : index
    %c0_111 = arith.constant 0 : index
    %170 = vector.load %arg9[%c0_110, %c0_111] : memref<1x32xf32, #tpu.memory_space<vmem>>, vector<1x32xf32>
    %c0_112 = arith.constant 0 : index
    %c0_113 = arith.constant 0 : index
    %171 = vector.load %arg10[%c0_112, %c0_113] : memref<1x32xf32, #tpu.memory_space<vmem>>, vector<1x32xf32>
    %cst_114 = arith.constant dense<0.000000e+00> : vector<8xf32>
    %172 = vector.multi_reduction <add>, %169, %cst_114 [1] : vector<8x32xf32> to vector<8xf32>
    %173 = vector.shape_cast %172 : vector<8xf32> to vector<8x1xf32>
    %cst_115 = arith.constant 3.200000e+01 : f32
    %174 = vector.broadcast %cst_115 : f32 to vector<8x1xf32>
    %175 = arith.divf %173, %174 : vector<8x1xf32>
    %176 = vector.broadcast %175 : vector<8x1xf32> to vector<8x32xf32>
    %177 = arith.subf %169, %176 : vector<8x32xf32>
    %178 = arith.mulf %177, %177 : vector<8x32xf32>
    %cst_116 = arith.constant dense<0.000000e+00> : vector<8xf32>
    %179 = vector.multi_reduction <add>, %178, %cst_116 [1] : vector<8x32xf32> to vector<8xf32>
    %180 = vector.shape_cast %179 : vector<8xf32> to vector<8x1xf32>
    %cst_117 = arith.constant 3.200000e+01 : f32
    %181 = vector.broadcast %cst_117 : f32 to vector<8x1xf32>
    %182 = arith.divf %180, %181 : vector<8x1xf32>
    %183 = vector.broadcast %175 : vector<8x1xf32> to vector<8x32xf32>
    %184 = arith.subf %169, %183 : vector<8x32xf32>
    %cst_118 = arith.constant 9.99999974E-6 : f32
    %185 = vector.broadcast %cst_118 : f32 to vector<8x1xf32>
    %186 = arith.addf %182, %185 : vector<8x1xf32>
    %187 = math.rsqrt %186 : vector<8x1xf32>
    %188 = vector.broadcast %187 : vector<8x1xf32> to vector<8x32xf32>
    %189 = arith.mulf %184, %188 : vector<8x32xf32>
    %190 = vector.broadcast %170 : vector<1x32xf32> to vector<8x32xf32>
    %191 = arith.mulf %189, %190 : vector<8x32xf32>
    %192 = vector.broadcast %171 : vector<1x32xf32> to vector<8x32xf32>
    %193 = arith.addf %191, %192 : vector<8x32xf32>
    %c0_119 = arith.constant 0 : index
    %c0_120 = arith.constant 0 : index
    %194 = vector.load %arg11[%c0_119, %c0_120] : memref<32x128xf32, #tpu.memory_space<vmem>>, vector<32x128xf32>
    %cst_121 = arith.constant dense<0.000000e+00> : vector<8x128xf32>
    %195 = tpu.matmul %193, %194, %cst_121 {dimension_numbers = #tpu.dot_dimension_numbers<[1], [0], [0], [1], [0, 0, 1, 1], [], []>} : vector<8x32xf32>, vector<32x128xf32>, vector<8x128xf32> -> vector<8x128xf32>
    %c0_122 = arith.constant 0 : index
    %c0_123 = arith.constant 0 : index
    %196 = vector.load %arg12[%c0_122, %c0_123] : memref<1x128xf32, #tpu.memory_space<vmem>>, vector<1x128xf32>
    %197 = vector.broadcast %196 : vector<1x128xf32> to vector<8x128xf32>
    %198 = arith.addf %195, %197 : vector<8x128xf32>
    %cst_124 = arith.constant 5.000000e-01 : f32
    %199 = vector.broadcast %cst_124 : f32 to vector<8x128xf32>
    %200 = arith.mulf %199, %198 : vector<8x128xf32>
    %cst_125 = arith.constant 4.471500e-02 : f32
    %201 = vector.broadcast %cst_125 : f32 to vector<8x128xf32>
    %202 = arith.mulf %201, %198 : vector<8x128xf32>
    %203 = arith.mulf %202, %198 : vector<8x128xf32>
    %204 = arith.mulf %203, %198 : vector<8x128xf32>
    %205 = arith.addf %198, %204 : vector<8x128xf32>
    %cst_126 = arith.constant 0.797884583 : f32
    %206 = vector.broadcast %cst_126 : f32 to vector<8x128xf32>
    %207 = arith.mulf %206, %205 : vector<8x128xf32>
    %208 = math.tanh %207 : vector<8x128xf32>
    %cst_127 = arith.constant 1.000000e+00 : f32
    %209 = vector.broadcast %cst_127 : f32 to vector<8x128xf32>
    %210 = arith.addf %209, %208 : vector<8x128xf32>
    %211 = arith.mulf %200, %210 : vector<8x128xf32>
    %c0_128 = arith.constant 0 : index
    %c0_129 = arith.constant 0 : index
    %212 = vector.load %arg13[%c0_128, %c0_129] : memref<128x32xf32, #tpu.memory_space<vmem>>, vector<128x32xf32>
    %cst_130 = arith.constant dense<0.000000e+00> : vector<8x32xf32>
    %213 = tpu.matmul %211, %212, %cst_130 {dimension_numbers = #tpu.dot_dimension_numbers<[1], [0], [0], [1], [0, 0, 1, 1], [], []>} : vector<8x128xf32>, vector<128x32xf32>, vector<8x32xf32> -> vector<8x32xf32>
    %c0_131 = arith.constant 0 : index
    %c0_132 = arith.constant 0 : index
    %214 = vector.load %arg14[%c0_131, %c0_132] : memref<1x32xf32, #tpu.memory_space<vmem>>, vector<1x32xf32>
    %215 = vector.broadcast %214 : vector<1x32xf32> to vector<8x32xf32>
    %216 = arith.addf %213, %215 : vector<8x32xf32>
    %217 = arith.addf %169, %216 : vector<8x32xf32>
    %c0_133 = arith.constant 0 : index
    %c0_134 = arith.constant 0 : index
    %c0_135 = arith.constant 0 : index
    %218 = vector.load %arg15[%c0_133, %c0_134, %c0_135] : memref<1x8x32xf32, #tpu.memory_space<vmem>>, vector<1x8x32xf32>
    %219 = vector.shape_cast %218 : vector<1x8x32xf32> to vector<8x32xf32>
    %220 = vector.shape_cast %217 : vector<8x32xf32> to vector<1x8x32xf32>
    tpu.vector_store %arg15[%c0_133, %c0_134, %c0_135], %220 {strides = array<i32>} : memref<1x8x32xf32, #tpu.memory_space<vmem>>, vector<1x8x32xf32>,
    return
  }
  func.func @transform_0(%arg0: i32, %arg1: i32) -> (i32, i32, i32) {
    %c0_i32 = arith.constant 0 : i32
    %c0_i32_0 = arith.constant 0 : i32
    %c0_i32_1 = arith.constant 0 : i32
    return %arg0, %c0_i32, %c0_i32_0 : i32, i32, i32
  }
  func.func @transform_1(%arg0: i32, %arg1: i32) -> (i32, i32) {
    %c0_i32 = arith.constant 0 : i32
    %c0_i32_0 = arith.constant 0 : i32
    %c0_i32_1 = arith.constant 0 : i32
    return %c0_i32, %c0_i32_0 : i32, i32
  }
  func.func @transform_2(%arg0: i32, %arg1: i32) -> (i32, i32) {
    %c0_i32 = arith.constant 0 : i32
    %c0_i32_0 = arith.constant 0 : i32
    %c0_i32_1 = arith.constant 0 : i32
    return %c0_i32, %c0_i32_0 : i32, i32
  }
  func.func @transform_3(%arg0: i32, %arg1: i32) -> (i32, i32, i32, i32) {
    %c0_i32 = arith.constant 0 : i32
    %c0_i32_0 = arith.constant 0 : i32
    %c0_i32_1 = arith.constant 0 : i32
    %c0_i32_2 = arith.constant 0 : i32
    %c0_i32_3 = arith.constant 0 : i32
    return %c0_i32, %c0_i32_0, %c0_i32_1, %c0_i32_2 : i32, i32, i32, i32
  }
  func.func @transform_4(%arg0: i32, %arg1: i32) -> (i32, i32, i32, i32) {
    %c0_i32 = arith.constant 0 : i32
    %c0_i32_0 = arith.constant 0 : i32
    %c0_i32_1 = arith.constant 0 : i32
    %c0_i32_2 = arith.constant 0 : i32
    %c0_i32_3 = arith.constant 0 : i32
    return %c0_i32, %c0_i32_0, %c0_i32_1, %c0_i32_2 : i32, i32, i32, i32
  }
  func.func @transform_5(%arg0: i32, %arg1: i32) -> (i32, i32, i32) {
    %c0_i32 = arith.constant 0 : i32
    %c0_i32_0 = arith.constant 0 : i32
    %c0_i32_1 = arith.constant 0 : i32
    %c0_i32_2 = arith.constant 0 : i32
    return %c0_i32, %c0_i32_0, %c0_i32_1 : i32, i32, i32
  }
  func.func @transform_6(%arg0: i32, %arg1: i32) -> (i32, i32) {
    %c0_i32 = arith.constant 0 : i32
    %c0_i32_0 = arith.constant 0 : i32
    %c0_i32_1 = arith.constant 0 : i32
    return %c0_i32, %c0_i32_0 : i32, i32
  }
  func.func @transform_7(%arg0: i32, %arg1: i32) -> (i32, i32) {
    %c0_i32 = arith.constant 0 : i32
    %c0_i32_0 = arith.constant 0 : i32
    %c0_i32_1 = arith.constant 0 : i32
    return %c0_i32, %c0_i32_0 : i32, i32
  }
  func.func @transform_8(%arg0: i32, %arg1: i32) -> (i32, i32) {
    %c0_i32 = arith.constant 0 : i32
    %c0_i32_0 = arith.constant 0 : i32
    %c0_i32_1 = arith.constant 0 : i32
    return %c0_i32, %c0_i32_0 : i32, i32
  }
  func.func @transform_9(%arg0: i32, %arg1: i32) -> (i32, i32) {
    %c0_i32 = arith.constant 0 : i32
    %c0_i32_0 = arith.constant 0 : i32
    %c0_i32_1 = arith.constant 0 : i32
    return %c0_i32, %c0_i32_0 : i32, i32
  }
  func.func @transform_10(%arg0: i32, %arg1: i32) -> (i32, i32) {
    %c0_i32 = arith.constant 0 : i32
    %c0_i32_0 = arith.constant 0 : i32
    %c0_i32_1 = arith.constant 0 : i32
    return %c0_i32, %c0_i32_0 : i32, i32
  }
  func.func @transform_11(%arg0: i32, %arg1: i32) -> (i32, i32) {
    %c0_i32 = arith.constant 0 : i32
    %c0_i32_0 = arith.constant 0 : i32
    %c0_i32_1 = arith.constant 0 : i32
    return %c0_i32, %c0_i32_0 : i32, i32
  }
  func.func @transform_12(%arg0: i32, %arg1: i32) -> (i32, i32) {
    %c0_i32 = arith.constant 0 : i32
    %c0_i32_0 = arith.constant 0 : i32
    %c0_i32_1 = arith.constant 0 : i32
    return %c0_i32, %c0_i32_0 : i32, i32
  }
  func.func @transform_13(%arg0: i32, %arg1: i32) -> (i32, i32, i32) {
    %c0_i32 = arith.constant 0 : i32
    %c0_i32_0 = arith.constant 0 : i32
    return %arg0, %arg1, %c0_i32 : i32, i32, i32
  }
}

</mosaic_0001>

<bundles_post_ra>
// kernel: tpu_custom_call.1
= control target key start
LH: loop header
LB: loop body
LE: loop exit
PB: predicated region body
PF: predicated region fallthrough
CT: control target
= control target key end

     0   :  { %s4209_s0 = inlined_call_operand.vmem [shape: f32[2,8,32], index: 0, kind: input, shape index: {}]   ;;  %s4210_s1 = inlined_call_operand.vmem [shape: f32[1,32], index: 1, kind: input, shape index: {}]   ;;  %s4211_s2 = inlined_call_operand.vmem [shape: f32[1,32], index: 2, kind: input, shape index: {}]   ;;  %s4212_s3 = inlined_call_operand.vmem [shape: f32[3,4,32,8], index: 3, kind: input, shape index: {}]   ;;  %s4213_s4 = inlined_call_operand.vmem [shape: f32[3,4,1,8], index: 4, kind: input, shape index: {}]   ;;  %s4214_s5 = inlined_call_operand.vmem [shape: f32[4,8,32], index: 5, kind: input, shape index: {}]   ;;  %s4215_s6 = inlined_call_operand.vmem [shape: f32[1,32], index: 6, kind: input, shape index: {}]   ;;  %s4216_s7 = inlined_call_operand.vmem [shape: f32[1,32], index: 7, kind: input, shape index: {}]   ;;  %s4217_s8 = inlined_call_operand.vmem [shape: f32[1,32], index: 8, kind: input, shape index: {}]   ;;  %s4218_s9 = inlined_call_operand.vmem [shape: f32[32,128], index: 9, kind: input, shape index: {}]   ;;  %s4219_s10 = inlined_call_operand.vmem [shape: f32[1,128], index: 10, kind: input, shape index: {}]   ;;  %s4220_s11 = inlined_call_operand.vmem [shape: f32[128,32], index: 11, kind: input, shape index: {}]   ;;  %s4221_s12 = inlined_call_operand.vmem [shape: f32[1,32], index: 12, kind: input, shape index: {}]   ;;  %s4222_s13 = inlined_call_operand.hbm [shape: f32[2,8,32], index: 13, kind: output, shape index: {}]  }
   0x1   :  { %4225 = sst [smem:[#allocation9_spill]] %s4209_s0 }
   0x2   :  { %4226 = sst [smem:[#allocation10_spill]] %s4210_s1 }
   0x3   :  { %18 = vsyncpa [#allocation5], 0 }
   0x4   :  { %20 = vsyncpa [#allocation5 + $0x1], 0  ;;  %s3614_s25 = smov 0   ;;  %s3616_s26 = smov 0  }
   0x5   :  { %s3618_s27 = smov 0   ;;  %s3620_s28 = smov 0  }
   0x6   :  { %s3622_s29 = smov 0   ;;  %s3624_s30 = smov 0  }
   0x7 LB: > { %4227 = sst [smem:[#allocation7_spill]] %s3534_s29  ;;  %s2815_s14 = sadd.s32 4294967295, %s3538_s30   ;;  %s3538_s30 = sphi %s3624_s30, %s26_s30   ;;  %s3534_s29 = sphi %s3622_s29, %s4234_s29   ;;  %s3530_s28 = sphi %s3620_s28, %s4233_s28   ;;  %s3526_s27 = sphi %s3618_s27, %s4237_s27   ;;  %s3522_s26 = sphi %s3616_s26, %s4236_s26   ;;  %s3518_s25 = sphi %s3614_s25, %s4235_s25  }
   0x8   : > { %s2816_s15 = sadd.s32 4294967294, %s3538_s30   ;;  %s38_s16 = sadd.s32 1, %s3534_s29 }
   0x9   : > { %s325_s17 = sadd.s32 1, %s3526_s27  ;;  %p40_p0 = scmp.ge.s32.totalorder %s38_s16, 2 }
   0xa   : > { %p335_p1 = scmp.ne.s32.totalorder %s3526_s27, %s3522_s26  ;;  %p336_p2 = scmp.eq.s32.totalorder %s2815_s14, 1 }
   0xb   : > { %p341_p3 = scmp.ne.s32.totalorder %s3522_s26, %s3518_s25  ;;  %s4239_s16 = smov (%p40_p0, %s38_s16), 0 }
   0xc   : > { %4228 = sst [smem:[#allocation8_spill]] %s4239_s16  ;;  %p3654_p4 = por %p336_p2, %p335_p1 }
   0xd   : > { %p342_p5 = scmp.eq.s32.totalorder %s2816_s15, 1  ;;  %s320_s19 = ssub.s32 %s3534_s29, %s4239_s16 }
   0xe   : > { %p2819_p6 = scmp.ge.s32.totalorder %s3538_s30, 1  ;;  %p323_p7 = scmp.eq.s32.totalorder %s320_s19, 0 }
   0xf   : > { %p3661_p8 = por %p342_p5, %p341_p3  ;;  %p403_p9 = scmp.lt.s32.totalorder %s3538_s30, 3 }
  0x10   : > { %s3667_s21 = scalar_select %p323_p7, %s3526_s27, %s325_s17  }
  0x11   : > { %p404_p10 = pnand %p2819_p6, %p403_p9 }
  0x12   : > { %p446_p11 = scmp.lt.s32.totalorder (!%p404_p10), %s3530_s28, 1  ;;  %vm457_vm0 = vcmask (!%p404_p10), 261120   ;;  %s4231_s0 = sld [smem:[#allocation9_spill]] (!%p404_p10)  ;;  %v2822_v12 = vld [vmem:[%s4212_s3 + $0x80] sm:$0xff] (!%p404_p10)  ;;  %v2823_v13 = vld [vmem:[%s4212_s3 + $0x88] sm:$0xff] (!%p404_p10)  ;;  %v3540_v17 = vmov (!%p404_p10), 0.0|0.0  }
  0x13   : > { %407 = sbr.rel (%p404_p10) target bundleno = 3964 (0xf7c), region = 72  ;;  %v2843_v14 = vld [vmem:[%s4212_s3 + $0x120] sm:$0xff] (!%p404_p10)  ;;  %v3277_v15 = vpack.c.bf16 (!%p404_p10), %v2823_v13, %v2822_v12  ;;  %v2844_v16 = vld [vmem:[%s4212_s3 + $0x128] sm:$0xff] (!%p404_p10)  ;;  %3276 = vmatprep.subr.bf16.mxu0 (!%p404_p10), %v3540_v17  ;;  %3294 = vmatprep.subr.bf16.mxu1 (!%p404_p10), %v3540_v17  ;;  %v2824_v19 = vld [vmem:[%s4212_s3 + $0x90] sm:$0xff] (!%p404_p10)  ;;  %vm3541_vm1 = vmmov (!%p404_p10), 0   ;;  %v3542_v25 = vmov (!%p404_p10), 0.0  }
  0x14   : > { %v3295_v18 = vpack.c.bf16 (!%p404_p10), %v2844_v16, %v2843_v14  ;;  %v2825_v20 = vld [vmem:[%s4212_s3 + $0x98] sm:$0xff] (!%p404_p10)  ;;  %v2845_v21 = vld [vmem:[%s4212_s3 + $0x130] sm:$0xff] (!%p404_p10)  ;;  %3046 = vmatprep.mubr.msk.f32.mxu0 (!%p404_p10), %vm3541_vm1, %v3542_v25  ;;  %3079 = vmatprep.mubr.msk.f32.mxu1 (!%p404_p10), %vm3541_vm1, %v3542_v25  ;;  %s4232_s1 = sld [smem:[#allocation10_spill]] (!%p404_p10)  ;;  %v2829_v31 = vld [vmem:[%s4212_s3 + $0x100] sm:$0xff] (!%p404_p10)  ;;  %vm655_vm2 = vcmask (!%p404_p10), 64512   ;;  %s2927_s14 = sshll.u32 (!%p404_p10), %s3530_s28, 7 }
  0x15   : > { %3278 = vmatpush3.bf16.msra.mxu0 (!%p404_p10), %v3277_v15  ;;  %v3280_v22 = vpack.c.bf16 (!%p404_p10), %v2825_v20, %v2824_v19  ;;  %v2846_v23 = vld [vmem:[%s4212_s3 + $0x138] sm:$0xff] (!%p404_p10)  ;;  %v2830_v33 = vld [vmem:[%s4212_s3 + $0x108] sm:$0xff] (!%p404_p10)  ;;  %v2857_v34 = vld [vmem:[%s4212_s3 + $0x140] sm:$0xff] (!%p404_p10) }
  0x16   : > { %3296 = vmatpush3.bf16.msra.mxu1 (!%p404_p10), %v3295_v18  ;;  %3279 = vmatprep.subr.bf16.mxu0 (!%p404_p10), %v3540_v17  ;;  %v3298_v24 = vpack.c.bf16 (!%p404_p10), %v2846_v23, %v2845_v21  ;;  %v2858_v35 = vld [vmem:[%s4212_s3 + $0x148] sm:$0xff] (!%p404_p10)  ;;  %v3740_v36 = vld [vmem:[%s4211_s2] ss:$0 sm:$0xff] (!%p404_p10)  ;;  %v3283_v38 = vpack.c.bf16 (!%p404_p10), %v2830_v33, %v2829_v31  ;;  %v2831_v40 = vld [vmem:[%s4212_s3 + $0x110] sm:$0xff] (!%p404_p10) }
  0x17   : > { %3297 = vmatprep.subr.bf16.mxu1 (!%p404_p10), %v3540_v17  ;;  %v3307_v39 = vpack.c.bf16 (!%p404_p10), %v2858_v35, %v2857_v34  ;;  %v2832_v42 = vld [vmem:[%s4212_s3 + $0x118] sm:$0xff] (!%p404_p10)  ;;  %v2859_v43 = vld [vmem:[%s4212_s3 + $0x150] sm:$0xff] (!%p404_p10)  ;;  %v2836_v47 = vld [vmem:[%s4212_s3 + $0xa0] sm:$0xff] (!%p404_p10) }
  0x18   : > { %v2860_v44 = vld [vmem:[%s4212_s3 + $0x158] sm:$0xff] (!%p404_p10)  ;;  %v3286_v45 = vpack.c.bf16 (!%p404_p10), %v2832_v42, %v2831_v40  ;;  %v2837_v48 = vld [vmem:[%s4212_s3 + $0xa8] sm:$0xff] (!%p404_p10)  ;;  %v2871_v49 = vld [vmem:[%s4212_s3 + $0x160] sm:$0xff] (!%p404_p10) }
  0x19   : > { %3281 = vmatpush3.bf16.msra.mxu0 (!%p404_p10), %v3280_v22  ;;  %v3310_v46 = vpack.c.bf16 (!%p404_p10), %v2860_v44, %v2859_v43  ;;  %v2872_v50 = vld [vmem:[%s4212_s3 + $0x168] sm:$0xff] (!%p404_p10)  ;;  %v3289_v51 = vpack.c.bf16 (!%p404_p10), %v2837_v48, %v2836_v47  ;;  %v2838_v53 = vld [vmem:[%s4212_s3 + $0xb0] sm:$0xff] (!%p404_p10)  ;;  %v2839_v55 = vld [vmem:[%s4212_s3 + $0xb8] sm:$0xff] (!%p404_p10) }
  0x1a   : > { %s447_s22 = scalar_select %p446_p11, %s3530_s28, 1  ;;  %3299 = vmatpush3.bf16.msra.mxu1 %v3298_v24  ;;  %3282 = vmatprep.subr.bf16.mxu0 %v3540_v17  ;;  %v3723_v30 = vld [vmem:[%s4232_s1] ss:$0 sm:$0xff]  ;;  %v3319_v52 = vpack.c.bf16 %v2872_v50, %v2871_v49  ;;  %v2873_v56 = vld [vmem:[%s4212_s3 + $0x170] sm:$0xff]  ;;  %v2874_v57 = vld [vmem:[%s4212_s3 + $0x178] sm:$0xff]  ;;  %v3292_v59 = vpack.c.bf16 %v2839_v55, %v2838_v53 }
  0x1b   : > { %3306 = vmatprep.subr.bf16.mxu1 %v3540_v17  ;;  %v3322_v60 = vpack.c.bf16 %v2874_v57, %v2873_v56  ;;  %v2850_v61 = vld [vmem:[%s4212_s3 + $0xc0] sm:$0xff]  ;;  %v2851_v62 = vld [vmem:[%s4212_s3 + $0xc8] sm:$0xff]  ;;  %v1209_v18 = vld [vmem:[%s4212_s3 + $0x10] sm:$0xff] }
  0x1c   : > { %s2821_s23 = sshll.u32 %s447_s22, 3  ;;  %v1207_v12 = vld [vmem:[%s4212_s3] sm:$0xff]  ;;  %v1208_v13 = vld [vmem:[%s4212_s3 + $0x8] sm:$0xff]  ;;  %v1210_v19 = vld [vmem:[%s4212_s3 + $0x18] sm:$0xff] }
  0x1d   : > { %s449_s15 = scalar_lea.vmem %s4231_s0, %s2821_s23  ;;  %v3325_v15 = vpack.c.bf16 %v1208_v13, %v1207_v12  ;;  %v3328_v20 = vpack.c.bf16 %v1210_v19, %v1209_v18  ;;  %v2827_v22 = vld [vmem:[%s4213_s4 + $0x4] ss:$0 sm:$0xff]  ;;  %v2848_v23 = vld [vmem:[%s4213_s4 + $0x9] ss:$0 sm:$0xff]  ;;  %v2834_v31 = vld [vmem:[%s4213_s4 + $0x8] ss:$0 sm:$0xff]  ;;  %s4161_s23 = scalar_lea.hbm %s4222_s13, %s2927_s14 }
  0x1e   : > { %v3674_v0 = vld [vmem:[%s449_s15] sm:$0xff]  ;;  %s443_s0 = sand.u32 1, %s3522_s26  }
  0x1f   : > { %v458_v1 = vsel %vm457_vm0, %v3674_v0, 0.0  ;;  %v2841_v40 = vld [vmem:[%s4213_s4 + $0x5] ss:$0 sm:$0xff]  ;;  %v2855_v49 = vld [vmem:[%s4213_s4 + $0x6] ss:$0 sm:$0xff]  ;;  %s2820_s24 = sshll.u32 %s443_s0, 3 }
  0x20   : > { %459 = vadd.xlane.f32.xlu0 %v458_v1  ;;  %v2869_v53 = vld [vmem:[%s4213_s4 + $0x7] ss:$0 sm:$0xff]  ;;  %v2878_v57 = vld [vmem:[%s4213_s4] ss:$0 sm:$0xff]  ;;  %v2888_v19 = vld [vmem:[%s4213_s4 + $0x1] ss:$0 sm:$0xff] }
  0x21   : > { %s445_s15 = scalar_lea.vmem [#allocation4], %s2820_s24  ;;  %s2731_s29 = scalar_lea.sflag [#allocation5], %s443_s0 }
  0x22   : > { %s2745_s17 = sshll.u32 %s445_s15, 4  ;;  %s3543_s24 = smov [#allocation4]   ;;  %s4163_s17 = int_to_ptr.vmem [resolvable:$true] %s2745_s17 }
  0x23   : > { %s3460_s28 = scalar_lea.vmem %s4163_s17, 128  ;;  %s3464_s16 = sshll.u32 %s3543_s24, 4  ;;  %s3465_s16 = int_to_ptr.vmem [resolvable:$false] %s3464_s16 }
  0x24   : > { %1173 = vadd.xlane.f32.xlu0 %v458_v1  ;;  %v3301_v1 = vpack.c.bf16 %v2851_v62, %v2850_v61  ;;  %p3461_p12 = scmp.ne.s32.totalorder %s4163_s17, %s3460_s28  ;;  %s3466_s1 = scalar_lea.vmem %s3465_s16, 256 }
  0x25   : > { %p3467_p1 = scmp.lt.s32.totalorder %s4163_s17, %s3465_s16  ;;  %p3468_p2 = scmp.lt.s32.totalorder %s3466_s1, %s3460_s28 }
  0x26   : > { %p3462_p13 = pnand %p3461_p12, %p3654_p4 }
  0x27   : > { %p3469_p3 = por %p3468_p2, %p3467_p1 }
  0x28   : > { %p3463_p0 = pneg %p3462_p13 }
  0x2a   : > { %p3470_p5 = pnand %p3469_p3, %p3463_p0 }
  0xad   : > { %v460_v2 = vpop.xlane.xlu0 %459 }
  0xae   : > { %v462_v3 = vmul.f32 0.03125, %v460_v2  ;;  %v2852_v2 = vld [vmem:[%s4212_s3 + $0xd0] sm:$0xff] }
  0xb0   : > { %v463_v4 = vsub.f32 %v3674_v0, %v462_v3  ;;  %v2853_v3 = vld [vmem:[%s4212_s3 + $0xd8] sm:$0xff] }
  0xb1   : > { %v1174_v5 = vpop.xlane.xlu0 %1173 }
  0xb2   : > { %v1176_v6 = vmul.f32 0.03125, %v1174_v5  ;;  %v464_v7 = vmul.f32 %v463_v4, %v463_v4  ;;  %v2864_v5 = vld [vmem:[%s4212_s3 + $0xe0] sm:$0xff] }
  0xb4   : > { %v3680_v8 = vsub.f32 %v3674_v0, %v1176_v6  ;;  %v465_v9 = vsel %vm457_vm0, %v464_v7, 0.0  ;;  %v2865_v6 = vld [vmem:[%s4212_s3 + $0xe8] sm:$0xff] }
  0xb5   : > { %466 = vadd.xlane.f32.xlu1 %v465_v9  ;;  %v3313_v7 = vpack.c.bf16 %v2865_v6, %v2864_v5  ;;  %v2866_v9 = vld [vmem:[%s4212_s3 + $0xf0] sm:$0xff]  ;;  %v473_v5 = vlaneseq }
  0xb6   : > { %v1178_v10 = vmul.f32 %v3680_v8, %v3680_v8 }
  0xb7   : > { %v3932_v6 = vshrl.u32 %v473_v5, 7 }
  0xb8   : > { %v1179_v11 = vsel %vm457_vm0, %v1178_v10, 0.0  ;;  %v2867_v10 = vld [vmem:[%s4212_s3 + $0xf8] sm:$0xff] }
  0xb9   : > { %1180 = vadd.xlane.f32.xlu1 %v1179_v11  ;;  %v3316_v11 = vpack.c.bf16 %v2867_v10, %v2866_v9 }
 0x142   : > { %v467_v26 = vpop.xlane.xlu1 %466 }
 0x143   : > { %v468_v27 = vmul.f32 0.03125, %v467_v26 }
 0x145   : > { %v469_v28 = vadd.f32 1e-05, %v468_v27 }
 0x146   : > { %v1181_v54 = vpop.xlane.xlu1 %1180 }
 0x147   : > { %3436 = vrsqrt.f32 %v469_v28  ;;  %v1182_v58 = vmul.f32 0.03125, %v1181_v54 }
 0x149   : > { %v1183_v63 = vadd.f32 1e-05, %v1182_v58  ;;  %v2883_v58 = vld [vmem:[%s4212_s3 + $0x20] sm:$0xff] }
 0x14b   : > { %3438 = vrsqrt.f32 %v1183_v63 }
 0x151   : > { %v3437_v29 = vpop.eup %3436 }
 0x152   : > { %v471_v32 = vmul.f32 %v3437_v29, %v463_v4  ;;  %v3304_v4 = vpack.c.bf16 %v2853_v3, %v2852_v2  ;;  %v2885_v2 = vld [vmem:[%s4212_s3 + $0x30] sm:$0xff]  ;;  %v2886_v3 = vld [vmem:[%s4212_s3 + $0x38] sm:$0xff] }
 0x154   : > { %v478_v37 = vmul.f32 %v3723_v30, %v471_v32  ;;  %v2862_v32 = vld [vmem:[%s4213_s4 + $0xa] ss:$0 sm:$0xff] }
 0x155   : > { %v3439_v14 = vpop.eup %3438 }
 0x156   : > { %v3747_v41 = vadd.f32 %v3740_v36, %v478_v37  ;;  %v1185_v16 = vmul.f32 %v3439_v14, %v3680_v8 }
 0x158   : > { %3047 = vmatmul.mubr.msk.f32.vlgmr.msra.gmra.mrb[0].mxu0 %vm457_vm0, %v3747_v41  ;;  %3080 = vmatmul.mubr.msk.f32.vlgmr.msra.gmra.mrb[0].mxu1 %vm457_vm0, %v3747_v41  ;;  %v1192_v8 = vmul.f32 %v3723_v30, %v1185_v16 }
 0x159   : > { %3284 = vmatpush3.bf16.msra.mxu0 %v3283_v38  ;;  %3308 = vmatpush3.bf16.msra.mxu1 %v3307_v39 }
 0x15a   : > { %3285 = vmatprep.subr.bf16.mxu0 %v3540_v17  ;;  %3309 = vmatprep.subr.bf16.mxu1 %v3540_v17  ;;  %v3866_v21 = vadd.f32 %v3740_v36, %v1192_v8 }
 0x15b   : > { %3057 = vmatprep.mubr.msk.f32.mxu0 %vm3541_vm1, %v3542_v25  ;;  %3101 = vmatprep.mubr.msk.f32.mxu1 %vm3541_vm1, %v3542_v25 }
 0x15d   : > { %3287 = vmatpush3.bf16.msra.mxu0 %v3286_v45  ;;  %3311 = vmatpush3.bf16.msra.mxu1 %v3310_v46 }
 0x15e   : > { %3288 = vmatprep.subr.bf16.mxu0 %v3540_v17  ;;  %3318 = vmatprep.subr.bf16.mxu1 %v3540_v17 }
 0x160   : > { %3058 = vmatmul.mubr.msk.f32.vlgmr.msra.gmra.mrb[2].mxu0 %vm457_vm0, %v3747_v41  ;;  %3102 = vmatmul.mubr.msk.f32.vlgmr.msra.gmra.mrb[2].mxu1 %vm457_vm0, %v3747_v41 }
 0x161   : > { %3290 = vmatpush3.bf16.msra.mxu0 %v3289_v51  ;;  %3320 = vmatpush3.bf16.msra.mxu1 %v3319_v52 }
 0x162   : > { %3291 = vmatprep.subr.bf16.mxu0 %v3540_v17  ;;  %3321 = vmatprep.subr.bf16.mxu1 %v3540_v17 }
 0x163   : > { %3068 = vmatprep.mubr.msk.f32.mxu0 %vm3541_vm1, %v3542_v25  ;;  %3123 = vmatprep.mubr.msk.f32.mxu1 %vm3541_vm1, %v3542_v25 }
 0x165   : > { %3293 = vmatpush3.bf16.msra.mxu0 %v3292_v59  ;;  %3323 = vmatpush3.bf16.msra.mxu1 %v3322_v60  ;;  %v2884_v59 = vld [vmem:[%s4212_s3 + $0x28] sm:$0xff] }
 0x166   : > { %3300 = vmatprep.subr.bf16.mxu0 %v3540_v17  ;;  %3142 = vmatprep.subr.mxu1 %v3542_v25  ;;  %v3331_v63 = vpack.c.bf16 %v2884_v59, %v2883_v58 }
 0x168   : > { %3069 = vmatmul.mubr.msk.f32.vlgmr.msra.gmra.mrb[4].mxu0 %vm457_vm0, %v3747_v41  ;;  %3124 = vmatmul.mubr.msk.f32.vlgmr.msra.gmra.mrb[4].mxu1 %vm457_vm0, %v3747_v41 }
 0x169   : > { %3302 = vmatpush3.bf16.msra.mxu0 %v3301_v1  ;;  %3090 = vmatprep.mubr.msk.f32.mxu0 %vm3541_vm1, %v3542_v25 }
 0x16a   : > { %3303 = vmatprep.subr.bf16.mxu0 %v3540_v17  ;;  %3144 = vmatprep.mubr.msk.f32.mxu1 %vm3541_vm1, %v3542_v25 }
 0x16d   : > { %3305 = vmatpush3.bf16.msra.mxu0 %v3304_v4  ;;  %v3334_v4 = vpack.c.bf16 %v2886_v3, %v2885_v2 }
 0x16e   : > { %3312 = vmatprep.subr.bf16.mxu0 %v3540_v17 }
 0x170   : > { %3091 = vmatmul.mubr.msk.f32.vlgmr.msra.gmra.mrb[6].mxu0 %vm457_vm0, %v3747_v41 }
 0x171   : > { %3314 = vmatpush3.bf16.msra.mxu0 %v3313_v7  ;;  %3112 = vmatprep.mubr.msk.f32.mxu0 %vm3541_vm1, %v3542_v25  ;;  %v3934_v7 = vand.u32 127, %v473_v5 }
 0x172   : > { %3315 = vmatprep.subr.bf16.mxu0 %v3540_v17 }
 0x173   : > { %vm1206_vm3 = vcmp.ge.s32.totalorder %v3932_v6, %v3934_v7  ;;  %v2918_v6 = vld [vmem:[%s4214_s5 + $0x18] sm:$0xff] }
 0x175   : > { %3317 = vmatpush3.bf16.msra.mxu0 %v3316_v11 }
 0x176   : > { %3324 = vmatprep.subr.bf16.mxu0 %v3540_v17 }
 0x178   : > { %3113 = vmatmul.mubr.msk.f32.vlgmr.msra.gmra.mrb[8].mxu0 %vm457_vm0, %v3747_v41  ;;  %v2876_v41 = vld [vmem:[%s4213_s4 + $0xb] ss:$0 sm:$0xff] }
 0x179   : > { %3326 = vmatpush3.bf16.msra.mxu0 %v3325_v15  ;;  %3134 = vmatprep.mubr.msk.f32.mxu0 %vm3541_vm1, %v3542_v25 }
 0x17a   : > { %3327 = vmatprep.subr.bf16.mxu0 %v3540_v17 }
 0x17d   : > { %3329 = vmatpush3.bf16.msra.mxu0 %v3328_v20 }
 0x17e   : > { %3137 = vmatprep.subr.mxu0 %v3542_v25 }
 0x180   : > { %3135 = vmatmul.mubr.msk.f32.vlgmr.msra.gmra.mrb[10].mxu0 %vm457_vm0, %v3866_v21 }
 0x181   : > { %3139 = vmatprep.mubr.msk.f32.mxu0 %vm3541_vm1, %v3542_v25 }
 0x22b   : > { %v568_v24 = vpop.f32.mrb[0].mxu0  ;;  %v820_v26 = vpop.f32.mrb[0].mxu1 }
 0x22c   : > { %v569_v27 = vadd.f32 %v2827_v22, %v568_v24  ;;  %v821_v28 = vadd.f32 %v2848_v23, %v820_v26  ;;  %v3048_v29 = vpop.f32.mrb[1].mxu0  ;;  %v3081_v30 = vpop.f32.mrb[1].mxu1 }
 0x22e   : > { %656 = vst.msk [vmem:[#allocation2] sm:$0xff] %vm655_vm2, %v569_v27  ;;  %827 = vst.msk [vmem:[#allocation3 + $0x8] sm:$0xff] %vm655_vm2, %v821_v28 }
 0x233   : > { %v651_v33 = vpop.f32.mrb[2].mxu0  ;;  %v990_v34 = vpop.f32.mrb[2].mxu1 }
 0x234   : > { %v652_v35 = vadd.f32 %v2834_v31, %v651_v33  ;;  %v991_v36 = vadd.f32 %v2862_v32, %v990_v34  ;;  %v3059_v37 = vpop.f32.mrb[3].mxu0  ;;  %v3103_v38 = vpop.f32.mrb[3].mxu1 }
 0x235   : > { %v1292_v39 = vld [vmem:[#allocation2] sm:$0xff]  ;;  %v1631_v24 = vld [vmem:[#allocation3 + $0x8] sm:$0xff] }
 0x236   : > { %657 = vst.msk [vmem:[#allocation3] sm:$0xff] %vm655_vm2, %v652_v35  ;;  %997 = vst.msk [vmem:[#allocation3 + $0x10] sm:$0xff] %vm655_vm2, %v991_v36  ;;  %3138 = vmatpush3.xpose.msk.msra.mxu0 %vm655_vm2, %v1292_v39  ;;  %v1456_v37 = vld [vmem:[%s4214_s5] sm:$0xff] }
 0x237   : > { %3330 = vmatprep.subr.bf16.mxu0 %v3540_v17 }
 0x23b   : > { %v737_v42 = vpop.f32.mrb[4].mxu0  ;;  %v1160_v43 = vpop.f32.mrb[4].mxu1 }
 0x23c   : > { %v738_v44 = vadd.f32 %v2841_v40, %v737_v42  ;;  %v1161_v45 = vadd.f32 %v2876_v41, %v1160_v43  ;;  %v3070_v46 = vpop.f32.mrb[5].mxu0  ;;  %v3125_v47 = vpop.f32.mrb[5].mxu1  ;;  %v2893_v43 = vld [vmem:[%s4214_s5 + $0x8] sm:$0xff] }
 0x23d   : > { %v1381_v48 = vld [vmem:[#allocation3] sm:$0xff]  ;;  %v2897_v46 = vld [vmem:[%s4212_s3 + $0x48] sm:$0xff]  ;;  %v2028_v2 = vld [vmem:[#allocation3 + $0x10] sm:$0xff] }
 0x23e   : > { %825 = vst.msk [vmem:[#allocation2 + $0x8] sm:$0xff] %vm655_vm2, %v738_v44  ;;  %1167 = vst.msk [vmem:[#allocation3 + $0x18] sm:$0xff] %vm655_vm2, %v1161_v45  ;;  %3143 = vmatpush3.msra.mxu1 %v1381_v48  ;;  %v2896_v45 = vld [vmem:[%s4212_s3 + $0x40] sm:$0xff] }
 0x23f   : > { %3158 = vmatprep.subr.mxu1 %v3542_v25 }
 0x243   : > { %v907_v50 = vpop.f32.mrb[6].mxu0 }
 0x244   : > { %v908_v51 = vadd.f32 %v2855_v49, %v907_v50  ;;  %v3092_v52 = vpop.f32.mrb[7].mxu0  ;;  %v3337_v49 = vpack.c.bf16 %v2897_v46, %v2896_v45 }
 0x245   : > { %v1542_v22 = vld [vmem:[#allocation2 + $0x8] sm:$0xff]  ;;  %v2898_v52 = vld [vmem:[%s4212_s3 + $0x50] sm:$0xff] }
 0x246   : > { %995 = vst.msk [vmem:[#allocation2 + $0x10] sm:$0xff] %vm655_vm2, %v908_v51 }
 0x24b   : > { %v1077_v54 = vpop.f32.mrb[8].mxu0 }
 0x24c   : > { %v1078_v55 = vadd.f32 %v2869_v53, %v1077_v54  ;;  %v3114_v56 = vpop.f32.mrb[9].mxu0  ;;  %v2899_v53 = vld [vmem:[%s4212_s3 + $0x58] sm:$0xff] }
 0x24d   : > { %v1939_v42 = vld [vmem:[#allocation2 + $0x10] sm:$0xff] }
 0x24e   : > { %1165 = vst.msk [vmem:[#allocation2 + $0x18] sm:$0xff] %vm655_vm2, %v1078_v55  ;;  %v3340_v55 = vpack.c.bf16 %v2899_v53, %v2898_v52 }
 0x253   : > { %v1287_v60 = vpop.f32.mrb[10].mxu0 }
 0x254   : > { %v1288_v61 = vadd.f32 %v2878_v57, %v1287_v60  ;;  %v3136_v62 = vpop.f32.mrb[11].mxu0  ;;  %v2901_v60 = vld [vmem:[%s4213_s4 + $0x2] ss:$0 sm:$0xff] }
 0x256   : > { %v1291_v1 = vmul.f32 0.35355338, %v1288_v61 }
 0x258   : > { %3140 = vmatmul.mubr.msk.f32.vlgmr.msra.gmra.mrb[12].mxu0 %vm655_vm2, %v1291_v1 }
 0x259   : > { %3332 = vmatpush3.bf16.msra.mxu0 %v3331_v63  ;;  %3155 = vmatprep.mubr.msk.f32.mxu0 %vm3541_vm1, %v3542_v25 }
 0x25a   : > { %3333 = vmatprep.subr.bf16.mxu0 %v3540_v17 }
 0x25d   : > { %3335 = vmatpush3.bf16.msra.mxu0 %v3334_v4 }
 0x25e   : > { %3168 = vmatprep.subr.mxu0 %v3542_v25 }
 0x260   : > { %3156 = vmatmul.mubr.msk.f32.vlgmr.msra.gmra.mrb[14].mxu0 %vm457_vm0, %v3866_v21 }
 0x261   : > { %3170 = vmatprep.mubr.msk.f32.mxu0 %vm3541_vm1, %v3542_v25  ;;  %3169 = vmatpush3.msra.mxu0 %v2893_v43 }
 0x262   : > { %3336 = vmatprep.subr.bf16.mxu0 %v3540_v17 }
 0x32b   : > { %v1366_v9 = vpop.f32.mrb[12].mxu0 }
 0x32c   : > { %v1370_v10 = vsel %vm1206_vm3, %v1366_v9, -1e+30  ;;  %v3141_v11 = vpop.f32.mrb[13].mxu0 }
 0x32d   : > { %v1371_v12 = vsel %vm655_vm2, %v1370_v10, -inf }
 0x32e   : > { %1372 = vmax.xlane.f32.xlu0 %v1371_v12 }
 0x333   : > { %v1536_v13 = vpop.f32.mrb[14].mxu0 }
 0x334   : > { %v3157_v14 = vpop.f32.mrb[15].mxu0  ;;  %v1537_v20 = vadd.f32 %v2888_v19, %v1536_v13  ;;  %v2908_v13 = vld [vmem:[%s4212_s3 + $0x60] sm:$0xff] }
 0x335   : > { %v2909_v14 = vld [vmem:[%s4212_s3 + $0x68] sm:$0xff] }
 0x336   : > { %v1540_v23 = vmul.f32 0.35355338, %v1537_v20 }
 0x3bb   : > { %v1373_v15 = vpop.xlane.xlu0 %1372 }
 0x3bc   : > { %v1374_v16 = vsub.f32 %v1370_v10, %v1373_v15  ;;  %v3343_v15 = vpack.c.bf16 %v2909_v14, %v2908_v13  ;;  %v2921_v14 = vld [vmem:[%s4216_s7] ss:$0 sm:$0xff] }
 0x3be   : > { %v1375_v18 = vmul.f32 1.442695, %v1374_v16  ;;  %v2910_v16 = vld [vmem:[%s4212_s3 + $0x70] sm:$0xff] }
 0x3c0   : > { %3440 = vpow2.f32 %v1375_v18  ;;  %v2911_v18 = vld [vmem:[%s4212_s3 + $0x78] sm:$0xff] }
 0x3ca   : > { %v3441_v8 = vpop.eup %3440 }
 0x3cb   : > { %3145 = vmatmul.mubr.msk.f32.vlgmr.msra.gmra.mrb[6].mxu1 %vm655_vm2, %v3441_v8  ;;  %v1377_v32 = vsel %vm655_vm2, %v3441_v8, 0.0  ;;  %v3346_v8 = vpack.c.bf16 %v2911_v18, %v2910_v16  ;;  %v2922_v16 = vld [vmem:[%s4217_s8] ss:$0 sm:$0xff] }
 0x3cc   : > { %3159 = vmatpush3.xpose.msk.msra.mxu1 %vm655_vm2, %v1542_v22  ;;  %3160 = vmatprep.mubr.msk.f32.mxu1 %vm3541_vm1, %v3542_v25  ;;  %v2906_v22 = vld [vmem:[%s4214_s5 + $0x10] sm:$0xff] }
 0x3cd   : > { %3163 = vmatprep.subr.mxu1 %v3542_v25 }
 0x3cf   : > { %3161 = vmatmul.mubr.msk.f32.vlgmr.msra.gmra.mrb[8].mxu1 %vm655_vm2, %v1540_v23 }
 0x3d0   : > { %3164 = vmatpush3.msra.mxu1 %v1631_v24  ;;  %3165 = vmatprep.mubr.msk.f32.mxu1 %vm3541_vm1, %v3542_v25 }
 0x3d1   : > { %3173 = vmatprep.subr.mxu1 %v3542_v25 }
 0x49e   : > { %v1451_v26 = vpop.f32.mrb[6].mxu1 }
 0x49f   : > { %v3146_v27 = vpop.f32.mrb[7].mxu1 }
 0x4a2   : > { %v1615_v28 = vpop.f32.mrb[8].mxu1 }
 0x4a3   : > { %v1619_v29 = vsel %vm1206_vm3, %v1615_v28, -1e+30  ;;  %v3162_v30 = vpop.f32.mrb[9].mxu1 }
 0x4a4   : > { %v1620_v31 = vsel %vm655_vm2, %v1619_v29, -inf }
 0x4a5   : > { %1621 = vmax.xlane.f32.xlu1 %v1620_v31 }
 0x4a9   : > { %1378 = vadd.xlane.f32.xlu1 %v1377_v32 }
 0x532   : > { %v1622_v33 = vpop.xlane.xlu1 %1621 }
 0x533   : > { %v1623_v34 = vsub.f32 %v1619_v29, %v1622_v33  ;;  %v2264_v29 = vld [vmem:[#allocation2 + $0x18] sm:$0xff] }
 0x535   : > { %v1624_v35 = vmul.f32 1.442695, %v1623_v34  ;;  %v2353_v34 = vld [vmem:[#allocation3 + $0x18] sm:$0xff] }
 0x536   : > { %v1379_v36 = vpop.xlane.xlu1 %1378 }
 0x537   : > { %3442 = vpow2.f32 %v1624_v35 }
 0x538   : > { %3444 = vrcp.f32 %v1379_v36 }
 0x541   : > { %v3443_v38 = vpop.eup %3442 }
 0x542   : > { %v3445_v39 = vpop.eup %3444  ;;  %3166 = vmatmul.mubr.msk.f32.vlgmr.msra.gmra.mrb[10].mxu1 %vm655_vm2, %v3443_v38  ;;  %v1626_v40 = vsel %vm655_vm2, %v3443_v38, 0.0 }
 0x543   : > { %3174 = vmatpush3.msra.mxu1 %v1456_v37  ;;  %1627 = vadd.xlane.f32.xlu0 %v1626_v40  ;;  %v1455_v41 = vmul.f32 %v3445_v39, %v1451_v26 }
 0x544   : > { %3175 = vmatprep.mubr.msk.f32.mxu1 %vm3541_vm1, %v3542_v25  ;;  %3189 = vmatprep.subr.mxu1 %v3542_v25 }
 0x546   : > { %3176 = vmatmul.mubr.msk.f32.vlgmr.msra.gmra.mrb[12].mxu1 %vm655_vm2, %v1455_v41 }
 0x547   : > { %3191 = vmatprep.mubr.msk.f32.mxu1 %vm3541_vm1, %v3542_v25 }
 0x54a   : > { %3190 = vmatpush3.xpose.msk.msra.mxu1 %vm655_vm2, %v1939_v42 }
 0x54b   : > { %3194 = vmatprep.subr.mxu1 %v3542_v25 }
 0x5d0   : > { %v1628_v44 = vpop.xlane.xlu0 %1627 }
 0x5d1   : > { %3446 = vrcp.f32 %v1628_v44 }
 0x5db   : > { %v3447_v47 = vpop.eup %3446 }
 0x615   : > { %v1701_v48 = vpop.f32.mrb[10].mxu1 }
 0x616   : > { %v1705_v50 = vmul.f32 %v3447_v47, %v1701_v48  ;;  %v3167_v51 = vpop.f32.mrb[11].mxu1 }
 0x618   : > { %3171 = vmatmul.mubr.msk.f32.vlgmr.msra.gmra.mrb[16].mxu0 %vm655_vm2, %v1705_v50 }
 0x619   : > { %3338 = vmatpush3.bf16.msra.mxu0 %v3337_v49  ;;  %v1850_v54 = vpop.f32.mrb[12].mxu1  ;;  %3186 = vmatprep.mubr.msk.f32.mxu0 %vm3541_vm1, %v3542_v25 }
 0x61a   : > { %v3177_v56 = vpop.f32.mrb[13].mxu1  ;;  %3339 = vmatprep.subr.bf16.mxu0 %v3540_v17 }
 0x61d   : > { %3341 = vmatpush3.bf16.msra.mxu0 %v3340_v55 }
 0x61e   : > { %3199 = vmatprep.subr.mxu0 %v3542_v25 }
 0x620   : > { %3187 = vmatmul.mubr.msk.f32.vlgmr.msra.gmra.mrb[18].mxu0 %vm457_vm0, %v3866_v21 }
 0x621   : > { %3201 = vmatprep.mubr.msk.f32.mxu0 %vm3541_vm1, %v3542_v25  ;;  %3200 = vmatpush3.msra.mxu0 %v2906_v22 }
 0x622   : > { %3215 = vmatprep.subr.mxu0 %v3542_v25 }
 0x6eb   : > { %v1777_v57 = vpop.f32.mrb[16].mxu0 }
 0x6ec   : > { %v3997_v58 = vadd.f32 %v1850_v54, %v1777_v57  ;;  %v3172_v59 = vpop.f32.mrb[17].mxu0  ;;  %v2920_v54 = vld [vmem:[%s4215_s6] ss:$0 sm:$0xff] }
 0x6f3   : > { %v1933_v61 = vpop.f32.mrb[18].mxu0 }
 0x6f4   : > { %v1934_v62 = vadd.f32 %v2901_v60, %v1933_v61  ;;  %v3188_v63 = vpop.f32.mrb[19].mxu0 }
 0x6f6   : > { %v1937_v1 = vmul.f32 0.35355338, %v1934_v62  ;;  %v2542_v62 = vld [vmem:[%s4218_s9] sm:$0xff] }
 0x6f8   : > { %3192 = vmatmul.mubr.msk.f32.vlgmr.msra.gmra.mrb[14].mxu1 %vm655_vm2, %v1937_v1  ;;  %v2544_v1 = vld [vmem:[%s4218_s9 + $0x10] sm:$0xff] }
 0x6f9   : > { %3195 = vmatpush3.msra.mxu1 %v2028_v2  ;;  %3196 = vmatprep.mubr.msk.f32.mxu1 %vm3541_vm1, %v3542_v25  ;;  %v2545_v2 = vld [vmem:[%s4218_s9 + $0x18] sm:$0xff] }
 0x6fa   : > { %3342 = vmatprep.subr.bf16.mxu1 %v3540_v17 }
 0x7cb   : > { %v2012_v3 = vpop.f32.mrb[14].mxu1 }
 0x7cc   : > { %v2016_v4 = vsel %vm1206_vm3, %v2012_v3, -1e+30  ;;  %v3193_v5 = vpop.f32.mrb[15].mxu1  ;;  %v3352_v3 = vpack.c.bf16 %v2545_v2, %v2544_v1 }
 0x7cd   : > { %v2017_v9 = vsel %vm655_vm2, %v2016_v4, -inf  ;;  %v2636_v5 = vld [vmem:[%s4220_s11 + $0x8] sm:$0xff] }
 0x7ce   : > { %2018 = vmax.xlane.f32.xlu0 %v2017_v9 }
 0x85b   : > { %v2019_v10 = vpop.xlane.xlu0 %2018 }
 0x85c   : > { %v2020_v11 = vsub.f32 %v2016_v4, %v2019_v10  ;;  %v2635_v4 = vld [vmem:[%s4220_s11] sm:$0xff] }
 0x85d   : > { %v3355_v9 = vpack.c.bf16 %v2636_v5, %v2635_v4 }
 0x85e   : > { %v2021_v12 = vmul.f32 1.442695, %v2020_v11 }
 0x860   : > { %3448 = vpow2.f32 %v2021_v12 }
 0x86a   : > { %v3449_v19 = vpop.eup %3448 }
 0x86b   : > { %3197 = vmatmul.mubr.msk.f32.vlgmr.msra.gmra.mrb[16].mxu1 %vm655_vm2, %v3449_v19  ;;  %v2023_v20 = vsel %vm655_vm2, %v3449_v19, 0.0 }
 0x86c   : > { %3344 = vmatpush3.bf16.msra.mxu1 %v3343_v15  ;;  %2024 = vadd.xlane.f32.xlu1 %v2023_v20  ;;  %v2637_v20 = vld [vmem:[%s4220_s11 + $0x10] sm:$0xff] }
 0x86d   : > { %3345 = vmatprep.subr.bf16.mxu1 %v3540_v17  ;;  %3212 = vmatprep.mubr.msk.f32.mxu1 %vm3541_vm1, %v3542_v25 }
 0x870   : > { %3347 = vmatpush3.bf16.msra.mxu1 %v3346_v8  ;;  %v2638_v8 = vld [vmem:[%s4220_s11 + $0x18] sm:$0xff] }
 0x871   : > { %3225 = vmatprep.subr.mxu1 %v3542_v25  ;;  %v3358_v22 = vpack.c.bf16 %v2638_v8, %v2637_v20 }
 0x873   : > { %3213 = vmatmul.mubr.msk.f32.vlgmr.msra.gmra.mrb[18].mxu1 %vm457_vm0, %v3866_v21  ;;  %v2913_v21 = vld [vmem:[%s4213_s4 + $0x3] ss:$0 sm:$0xff] }
 0x874   : > { %3227 = vmatprep.mubr.msk.f32.mxu1 %vm3541_vm1, %v3542_v25  ;;  %3226 = vmatpush3.msra.mxu1 %v2918_v6 }
 0x875   : > { %3354 = vmatprep.subr.bf16.mxu1 %v3540_v17 }
 0x8f9   : > { %v2025_v23 = vpop.xlane.xlu1 %2024 }
 0x8fa   : > { %3450 = vrcp.f32 %v2025_v23  ;;  %v2639_v23 = vld [vmem:[%s4220_s11 + $0x20] sm:$0xff] }
 0x904   : > { %v3451_v24 = vpop.eup %3450 }
 0x93e   : > { %v2098_v26 = vpop.f32.mrb[16].mxu1 }
 0x93f   : > { %v2102_v27 = vmul.f32 %v3451_v24, %v2098_v26  ;;  %v3198_v28 = vpop.f32.mrb[17].mxu1  ;;  %v2640_v24 = vld [vmem:[%s4220_s11 + $0x28] sm:$0xff] }
 0x940   : > { %v3361_v26 = vpack.c.bf16 %v2640_v24, %v2639_v23  ;;  %v2642_v28 = vld [vmem:[%s4220_s11 + $0x38] sm:$0xff] }
 0x941   : > { %3202 = vmatmul.mubr.msk.f32.vlgmr.msra.gmra.mrb[20].mxu0 %vm655_vm2, %v2102_v27  ;;  %v2641_v27 = vld [vmem:[%s4220_s11 + $0x30] sm:$0xff] }
 0x942   : > { %3216 = vmatpush3.xpose.msk.msra.mxu0 %vm655_vm2, %v2264_v29  ;;  %3217 = vmatprep.mubr.msk.f32.mxu0 %vm3541_vm1, %v3542_v25  ;;  %v3364_v29 = vpack.c.bf16 %v2642_v28, %v2641_v27 }
 0x943   : > { %3220 = vmatprep.subr.mxu0 %v3542_v25 }
 0x946   : > { %v2258_v30 = vpop.f32.mrb[18].mxu1 }
 0x947   : > { %v2259_v31 = vadd.f32 %v2913_v21, %v2258_v30  ;;  %v3214_v32 = vpop.f32.mrb[19].mxu1  ;;  %v2643_v21 = vld [vmem:[%s4220_s11 + $0x40] sm:$0xff]  ;;  %v2644_v30 = vld [vmem:[%s4220_s11 + $0x48] sm:$0xff] }
 0x948   : > { %v2645_v32 = vld [vmem:[%s4220_s11 + $0x50] sm:$0xff] }
 0x949   : > { %v2262_v33 = vmul.f32 0.35355338, %v2259_v31  ;;  %v3367_v31 = vpack.c.bf16 %v2644_v30, %v2643_v21 }
 0x94b   : > { %3218 = vmatmul.mubr.msk.f32.vlgmr.msra.gmra.mrb[22].mxu0 %vm655_vm2, %v2262_v33  ;;  %v2646_v33 = vld [vmem:[%s4220_s11 + $0x58] sm:$0xff] }
 0x94c   : > { %3221 = vmatpush3.msra.mxu0 %v2353_v34  ;;  %3222 = vmatprep.mubr.msk.f32.mxu0 %vm3541_vm1, %v3542_v25  ;;  %v3370_v34 = vpack.c.bf16 %v2646_v33, %v2645_v32 }
 0x94d   : > { %3348 = vmatprep.subr.bf16.mxu0 %v3540_v17 }
 0xa14   : > { %v2174_v35 = vpop.f32.mrb[20].mxu0 }
 0xa15   : > { %v2178_v36 = vadd.f32 %v2174_v35, %v3997_v58  ;;  %v3203_v37 = vpop.f32.mrb[21].mxu0  ;;  %v2647_v35 = vld [vmem:[%s4220_s11 + $0x60] sm:$0xff] }
 0xa1e   : > { %v2337_v38 = vpop.f32.mrb[22].mxu0 }
 0xa1f   : > { %v2341_v39 = vsel %vm1206_vm3, %v2337_v38, -1e+30  ;;  %v3219_v40 = vpop.f32.mrb[23].mxu0  ;;  %v2649_v38 = vld [vmem:[%s4220_s11 + $0x70] sm:$0xff] }
 0xa20   : > { %v2342_v41 = vsel %vm655_vm2, %v2341_v39, -inf }
 0xa21   : > { %2343 = vmax.xlane.f32.xlu0 %v2342_v41  ;;  %v2923_v41 = vld [vmem:[%s4219_s10] ss:$0 sm:$0xff] }
 0xaae   : > { %v2344_v42 = vpop.xlane.xlu0 %2343 }
 0xaaf   : > { %v2345_v43 = vsub.f32 %v2341_v39, %v2344_v42  ;;  %v2650_v39 = vld [vmem:[%s4220_s11 + $0x78] sm:$0xff] }
 0xab0   : > { %v3376_v40 = vpack.c.bf16 %v2650_v39, %v2649_v38 }
 0xab1   : > { %v2346_v44 = vmul.f32 1.442695, %v2345_v43 }
 0xab3   : > { %3452 = vpow2.f32 %v2346_v44 }
 0xabd   : > { %v3453_v45 = vpop.eup %3452 }
 0xabe   : > { %3223 = vmatmul.mubr.msk.f32.vlgmr.msra.gmra.mrb[24].mxu0 %vm655_vm2, %v3453_v45  ;;  %v2348_v46 = vsel %vm655_vm2, %v3453_v45, 0.0 }
 0xabf   : > { %2349 = vadd.xlane.f32.xlu1 %v2348_v46  ;;  %3238 = vmatprep.mubr.msk.f32.mxu0 %vm3541_vm1, %v3542_v25 }
 0xb4c   : > { %v2350_v7 = vpop.xlane.xlu1 %2349 }
 0xb4d   : > { %3454 = vrcp.f32 %v2350_v7 }
 0xb57   : > { %v3455_v47 = vpop.eup %3454 }
 0xb91   : > { %v2423_v48 = vpop.f32.mrb[24].mxu0 }
 0xb92   : > { %v2427_v49 = vmul.f32 %v3455_v47, %v2423_v48  ;;  %v3224_v50 = vpop.f32.mrb[25].mxu0 }
 0xb94   : > { %3228 = vmatmul.mubr.msk.f32.vlgmr.msra.gmra.mrb[20].mxu1 %vm655_vm2, %v2427_v49 }
 0xb95   : > { %3273 = vmatprep.mubr.msk.f32.mxu1 %vm3541_vm1, %v3542_v25  ;;  %3356 = vmatpush3.bf16.msra.mxu1 %v3355_v9 }
 0xb96   : > { %3357 = vmatprep.subr.bf16.mxu1 %v3540_v17 }
 0xb99   : > { %3359 = vmatpush3.bf16.msra.mxu1 %v3358_v22 }
 0xb9a   : > { %3360 = vmatprep.subr.bf16.mxu1 %v3540_v17 }
 0xb9d   : > { %3362 = vmatpush3.bf16.msra.mxu1 %v3361_v26 }
 0xb9e   : > { %3363 = vmatprep.subr.bf16.mxu1 %v3540_v17 }
 0xba1   : > { %3365 = vmatpush3.bf16.msra.mxu1 %v3364_v29 }
 0xba2   : > { %3366 = vmatprep.subr.bf16.mxu1 %v3540_v17 }
 0xba5   : > { %3368 = vmatpush3.bf16.msra.mxu1 %v3367_v31 }
 0xba6   : > { %3369 = vmatprep.subr.bf16.mxu1 %v3540_v17 }
 0xba9   : > { %3371 = vmatpush3.bf16.msra.mxu1 %v3370_v34 }
 0xbaa   : > { %3372 = vmatprep.subr.bf16.mxu1 %v3540_v17 }
 0xc67   : > { %v2499_v51 = vpop.f32.mrb[20].mxu1 }
 0xc68   : > { %v2503_v52 = vadd.f32 %v2499_v51, %v2178_v36  ;;  %v3229_v53 = vpop.f32.mrb[21].mxu1  ;;  %v2648_v36 = vld [vmem:[%s4220_s11 + $0x68] sm:$0xff]  ;;  %v2925_v51 = vld [vmem:[%s4221_s12] ss:$0 sm:$0xff] }
 0xc69   : > { %v3373_v37 = vpack.c.bf16 %v2648_v36, %v2647_v35 }
 0xc6a   : > { %v2504_v55 = vadd.f32 %v2503_v52, %v3674_v0  ;;  %v2543_v0 = vld [vmem:[%s4218_s9 + $0x8] sm:$0xff] }
 0xc6b   : > { %v3349_v63 = vpack.c.bf16 %v2543_v0, %v2542_v62  ;;  %3374 = vmatpush3.bf16.msra.mxu1 %v3373_v37 }
 0xc6c   : > { %v4068_v56 = vadd.f32 %v2920_v54, %v2504_v55  ;;  %3375 = vmatprep.subr.bf16.mxu1 %v3540_v17 }
 0xc6d   : > { %3350 = vmatpush3.bf16.msra.mxu0 %v3349_v63 }
 0xc6e   : > { %v2515_v57 = vsel %vm457_vm0, %v4068_v56, 0.0  ;;  %3351 = vmatprep.subr.bf16.mxu0 %v3540_v17 }
 0xc6f   : > { %2516 = vadd.xlane.f32.xlu0 %v2515_v57  ;;  %3377 = vmatpush3.bf16.msra.mxu1 %v3376_v40 }
 0xc71   : > { %3353 = vmatpush3.bf16.msra.mxu0 %v3352_v3 }
 0xcfc   : > { %v2517_v58 = vpop.xlane.xlu0 %2516 }
 0xcfd   : > { %v2518_v59 = vmul.f32 0.03125, %v2517_v58 }
 0xcff   : > { %v2519_v60 = vsub.f32 %v4068_v56, %v2518_v59 }
 0xd01   : > { %v2520_v25 = vmul.f32 %v2519_v60, %v2519_v60 }
 0xd03   : > { %v2521_v61 = vsel %vm457_vm0, %v2520_v25, 0.0 }
 0xd04   : > { %2522 = vadd.xlane.f32.xlu1 %v2521_v61 }
 0xd91   : > { %v2523_v10 = vpop.xlane.xlu1 %2522 }
 0xd92   : > { %v2524_v11 = vmul.f32 0.03125, %v2523_v10 }
 0xd94   : > { %v2525_v12 = vadd.f32 1e-05, %v2524_v11 }
 0xd96   : > { %3456 = vrsqrt.f32 %v2525_v12 }
 0xda0   : > { %v3457_v13 = vpop.eup %3456 }
 0xda1   : > { %v2527_v15 = vmul.f32 %v3457_v13, %v2519_v60 }
 0xda3   : > { %v2534_v18 = vmul.f32 %v2921_v14, %v2527_v15 }
 0xda5   : > { %v2541_v19 = vadd.f32 %v2922_v16, %v2534_v18 }
 0xda7   : > { %3239 = vmatmul.mubr.msk.f32.vlgmr.msra.gmra.mrb[26].mxu0 %vm457_vm0, %v2541_v19 }
 0xe7a   : > { %v2622_v42 = vpop.f32.mrb[26].mxu0 }
 0xe7b   : > { %v2623_v43 = vadd.f32 %v2923_v41, %v2622_v42  ;;  %v3240_v44 = vpop.f32.mrb[27].mxu0 }
 0xe7d   : > { %v2627_v45 = vmul.f32 0.044715, %v2623_v43  ;;  %v2626_v49 = vmul.f32 0.5, %v2623_v43 }
 0xe7f   : > { %v2628_v46 = vmul.f32 %v2627_v45, %v2623_v43 }
 0xe81   : > { %v2629_v6 = vmul.f32 %v2628_v46, %v2623_v43 }
 0xe83   : > { %v2630_v7 = vadd.f32 %v2629_v6, %v2623_v43 }
 0xe85   : > { %v2631_v47 = vmul.f32 0.7978846, %v2630_v7 }
 0xe87   : > { %3458 = vtanh.f32 %v2631_v47 }
 0xe91   : > { %v3459_v48 = vpop.eup %3458 }
 0xe92   : > { %v2633_v50 = vadd.f32 1.0, %v3459_v48 }
 0xe94   : > { %v2634_v17 = vmul.f32 %v2633_v50, %v2626_v49 }
 0xe96   : > { %3274 = vmatmul.mubr.f32.vlgmr.msra.gmra.mrb[22].mxu1 %v2634_v17 }
 0xf69   : > { %v2724_v52 = vpop.f32.mrb[22].mxu1 }
 0xf6a   : > { %v2725_v53 = vadd.f32 %v2925_v51, %v2724_v52  ;;  %v3275_v54 = vpop.f32.mrb[23].mxu1 }
 0xf6c   : > { %v2728_v55 = vadd.f32 %v2725_v53, %v4068_v56 }
 0xf6e   : > { %2729 = vst.msk [vmem:[%s445_s15] sm:$0xff] %vm457_vm0, %v2728_v55 }
 0xf6f   : > { %3473 = shalt.err (!%p3470_p5)
}
 0xf70   : > { %s3474_s0 = scalar_lea.hbm %s4161_s23, 128  ;;  %s3478_s19 = scalar_lea.hbm %s4222_s13, 256 }
 0xf71   : > { %p3475_p6 = scmp.ne.s32.totalorder %s4161_s23, %s3474_s0  ;;  %p3479_p10 = scmp.lt.u32.totalorder %s4161_s23, %s4222_s13 }
 0xf72   : > { %p3480_p11 = scmp.lt.u32.totalorder %s3478_s19, %s3474_s0  ;;  %p3482_p13 = scmp.lt.u32.totalorder %s3474_s0, %s4161_s23 }
 0xf73   : > { %p3476_p7 = pnand %p3475_p6, %p3654_p4 }
 0xf74   : > { %p3481_p12 = por %p3480_p11, %p3479_p10 }
 0xf75   : > { %p3477_p9 = pneg %p3476_p7 }
 0xf76   : > { %p3483_p0 = por %p3482_p13, %p3481_p12 }
 0xf78   : > { %p3484_p1 = pnand %p3483_p0, %p3477_p9 }
 0xf7a   : > { %3487 = shalt.err (!%p3484_p1)
}
 0xf7b   : > { %3378 = dma.vmem_to_hbm [thread:$0]  (%p3654_p4), %s4163_s17, 128, %s4161_s23, %s2731_s29  }
 0xf7c PF: > { %p3384_p2 = scmp.ge.s32.totalorder %s3538_s30, 2  ;;  %s2757_s1 = sand.u32 1, %s3518_s25  }
 0xf7d   : > { %s2758_s28 = scalar_lea.sflag [#allocation5], %s2757_s1 }
 0xf7e   : > { %p3381_p3 = pnand %p3384_p2, %p3661_p8 }
 0xf80   : > { %3513 = dma.done.wait (!%p3381_p3), %s2758_s28, 128  }
 0xf81   : > { %3515 = vsyncadd (!%p3381_p3), %s2758_s28, 4294967168  ;;  %s26_s30 = sadd.s32 1, %s3538_s30   ;;  %s4233_s28 = sld [smem:[#allocation7_spill]] }
 0xf82   : > { %p23_p5 = scmp.ge.s32.totalorder %s26_s30, 4   ;;  %s4234_s29 = sld [smem:[#allocation8_spill]] }
 0xf83   : > { %s4235_s25 = smov %s3522_s26  ;;  %s4236_s26 = smov %s3526_s27 }
 0xf84   : > { %s4237_s27 = smov %s3667_s21  ;;  %25 = sbr.rel (!%p23_p5) target bundleno = 7 (0x7), region = 149 }
 0xf8b   :  { %2763 = vsyncpa [#allocation5], 1 }
 0xf8c   :  { %2765 = vsyncpa [#allocation5 + $0x1], 1 }

</bundles_post_ra>
